<compile_context>
chip_gen: v6e
topology: v6e:2x2x1
jax: 0.10.0
libtpu: 0.0.40
codegen_flags: <defaults>
</compile_context>

<pallas_src>
import jax
import jax.numpy as jnp
from jax import lax
from jax.experimental import pallas as pl
from jax.experimental.pallas import tpu as pltpu
import numpy as np


def _lstm_encoder_kernel(num_layers):
    """Builds the kernel body for a fixed (static) number of layers."""

    def kernel(x_ref, wih_ref, whh_ref, b_ref, o_ref, seq_buf, xw_buf):
        # x_ref  : (T, Bp, E)    time-major input sequence
        # wih_ref: (L, E, 4E)    input->gates weights, pre-transposed
        # whh_ref: (L, E, 4E)    hidden->gates weights, pre-transposed
        # b_ref  : (L, 1, 4E)    b_ih + b_hh
        # o_ref  : (T, Bp, E)    output (lstm_out + residual)
        # seq_buf: (T, Bp, E)    single scratch for intermediate-layer outputs
        # xw_buf : (T, Bp, 4E)   hoisted x @ W_ih + b for the current layer
        T, Bp, E = x_ref.shape
        unroll = True if T <= 16 else 4

        for layer in range(num_layers):
            last = layer == num_layers - 1
            in_buf = x_ref if layer == 0 else seq_buf
            out_buf = o_ref if last else seq_buf

            wih = wih_ref[layer]  # (E, 4E)
            whh = whh_ref[layer]  # (E, 4E)  -- loaded once per layer
            b = b_ref[layer]      # (1, 4E)

            # --- Hoisted input projection for all timesteps (bias folded in).
            # (T, Bp, E) -> (T*Bp, E) is a tile-preserving collapse (Bp % 8 == 0).
            x_flat = in_buf[...].reshape(T * Bp, E)
            xw = jnp.dot(x_flat, wih, preferred_element_type=jnp.float32) + b
            xw_buf[...] = xw.reshape(T, Bp, 4 * E)

            # --- Serial recurrence: only h @ W_hh is on the critical path.
            def step(t, carry, out_buf=out_buf, whh=whh, last=last):
                h, c = carry
                gates = (
                    jnp.dot(h, whh, preferred_element_type=jnp.float32)
                    + xw_buf[t]
                )  # (Bp, 4E)
                i_g = jax.nn.sigmoid(gates[:, 0 * E:1 * E])
                f_g = jax.nn.sigmoid(gates[:, 1 * E:2 * E])
                g_g = jnp.tanh(gates[:, 2 * E:3 * E])
                o_g = jax.nn.sigmoid(gates[:, 3 * E:4 * E])
                c_new = f_g * c + i_g * g_g
                h_new = o_g * jnp.tanh(c_new)
                if last:
                    # Fold the residual into the final store (dropout == id).
                    out_buf[t] = (h_new + x_ref[t]).astype(out_buf.dtype)
                else:
                    out_buf[t] = h_new.astype(out_buf.dtype)
                return (h_new, c_new)

            h0 = jnp.zeros((Bp, E), jnp.float32)
            c0 = jnp.zeros((Bp, E), jnp.float32)
            lax.fori_loop(0, T, step, (h0, c0), unroll=unroll)

    return kernel


def uni_lstm_encoder(x, w_ih, w_hh, b_ih, b_hh):
    """x: (B, T, E) batch-first float32.  Returns (B, T, E)."""
    B, T, E = x.shape
    L = w_ih.shape[0]
    Bp = max(8, ((B + 7) // 8) * 8)  # pad batch to sublane multiple

    x_tm = jnp.transpose(x, (1, 0, 2))                          # (T, B, E)
    x_pad = jnp.pad(x_tm, ((0, 0), (0, Bp - B), (0, 0)))        # (T, Bp, E)
    wih_t = jnp.transpose(w_ih, (0, 2, 1)).astype(jnp.float32)  # (L, E, 4E)
    whh_t = jnp.transpose(w_hh, (0, 2, 1)).astype(jnp.float32)  # (L, E, 4E)
    b = (b_ih + b_hh)[:, None, :].astype(jnp.float32)           # (L, 1, 4E)

    # Only layers > 0 read/write seq_buf; keep it tiny when L == 1.
    seq_shape = (T, Bp, E) if L > 1 else (1, 8, 128)

    # VMEM budget: everything whole-array resident (no grid => no double
    # buffering multiplier).  Give generous headroom, cap below physical.
    f32 = 4
    footprint = (
        2 * T * Bp * E * f32                     # x_pad + out
        + int(np.prod(seq_shape)) * f32          # seq scratch
        + T * Bp * 4 * E * f32                   # xw scratch
        + 2 * L * E * 4 * E * f32                # W_ih, W_hh
        + L * 4 * E * f32                        # bias
    )
    vmem_limit = int(min(2 * footprint + (8 << 20), 120 << 20))

    out = pl.pallas_call(
        _lstm_encoder_kernel(L),
        out_shape=jax.ShapeDtypeStruct((T, Bp, E), jnp.float32),
        in_specs=[pl.BlockSpec(memory_space=pltpu.MemorySpace.VMEM)] * 4,
        out_specs=pl.BlockSpec(memory_space=pltpu.MemorySpace.VMEM),
        scratch_shapes=[
            pltpu.VMEM(seq_shape, jnp.float32),
            pltpu.VMEM((T, Bp, 4 * E), jnp.float32),
        ],
        compiler_params=pltpu.CompilerParams(vmem_limit_bytes=vmem_limit),
    )(x_pad, wih_t, whh_t, b)

    out = out[:, :B, :]                    # drop batch padding
    return jnp.transpose(out, (1, 0, 2))   # back to (B, T, E)


def lstm_encoder_ref(x, w_ih, w_hh, b_ih, b_hh):
    """Pure-JAX reference matching PyTorch nn.LSTM semantics (eval mode)."""
    B, T, E = x.shape
    L = w_ih.shape[0]
    cur = x
    for l in range(L):
        h = jnp.zeros((B, E), jnp.float32)
        c = jnp.zeros((B, E), jnp.float32)
        outs = []
        for t in range(T):
            g = (cur[:, t, :] @ w_ih[l].T + b_ih[l]
                 + h @ w_hh[l].T + b_hh[l])
            i_g = jax.nn.sigmoid(g[:, :E])
            f_g = jax.nn.sigmoid(g[:, E:2 * E])
            g_g = jnp.tanh(g[:, 2 * E:3 * E])
            o_g = jax.nn.sigmoid(g[:, 3 * E:])
            c = f_g * c + i_g * g_g
            h = o_g * jnp.tanh(c)
            outs.append(h)
        cur = jnp.stack(outs, axis=1)
    return cur + x


if __name__ == "__main__":
    # args: embed_dim=32, num_enc_layers=2, dropout irrelevant in eval mode
    B, T, E, L = 2, 8, 32, 2

    key = jax.random.PRNGKey(0)
    kx, kw = jax.random.split(key)
    x = jax.random.normal(kx, (B, T, E), dtype=jnp.float32)

    # nn.LSTM parameters, uniform(-0.01, 0.01) as in the module's __init__.
    # (input_size == hidden_size == E so all layers share the same shapes.)
    kws = jax.random.split(kw, 4)
    w_ih = jax.random.uniform(kws[0], (L, 4 * E, E), minval=-0.01, maxval=0.01)
    w_hh = jax.random.uniform(kws[1], (L, 4 * E, E), minval=-0.01, maxval=0.01)
    b_ih = jax.random.uniform(kws[2], (L, 4 * E), minval=-0.01, maxval=0.01)
    b_hh = jax.random.uniform(kws[3], (L, 4 * E), minval=-0.01, maxval=0.01)

    y = uni_lstm_encoder(x, w_ih, w_hh, b_ih, b_hh)
    y = jax.block_until_ready(y)

    y_ref = lstm_encoder_ref(x, w_ih, w_hh, b_ih, b_hh)
    np.testing.assert_allclose(np.asarray(y), np.asarray(y_ref),
                               rtol=1e-5, atol=1e-5)
    print("KERNEL_OK")
</pallas_src>

<mosaic_0001>
module attributes {stable_mosaic.version = 11 : i64} {
  func.func @kernel(%arg0: memref<8x8x32xf32, #tpu.memory_space<vmem>>, %arg1: memref<2x32x128xf32, #tpu.memory_space<vmem>>, %arg2: memref<2x32x128xf32, #tpu.memory_space<vmem>>, %arg3: memref<2x1x128xf32, #tpu.memory_space<vmem>>, %arg4: memref<8x8x32xf32, #tpu.memory_space<vmem>>, %arg5: memref<8x8x32xf32, #tpu.memory_space<vmem>>, %arg6: memref<8x8x128xf32, #tpu.memory_space<vmem>>) attributes {dimension_semantics = [], scalar_prefetch = 0 : i64, scratch_operands = 2 : i64, tpu.core_type = #tpu.core_type<tc>} {
    %c0 = arith.constant 0 : index
    %c0_0 = arith.constant 0 : index
    %c0_1 = arith.constant 0 : index
    %0 = vector.load %arg1[%c0, %c0_0, %c0_1] : memref<2x32x128xf32, #tpu.memory_space<vmem>>, vector<1x32x128xf32>
    %1 = vector.shape_cast %0 : vector<1x32x128xf32> to vector<32x128xf32>
    %c0_2 = arith.constant 0 : index
    %c0_3 = arith.constant 0 : index
    %c0_4 = arith.constant 0 : index
    %2 = vector.load %arg2[%c0_2, %c0_3, %c0_4] : memref<2x32x128xf32, #tpu.memory_space<vmem>>, vector<1x32x128xf32>
    %3 = vector.shape_cast %2 : vector<1x32x128xf32> to vector<32x128xf32>
    %c0_5 = arith.constant 0 : index
    %c0_6 = arith.constant 0 : index
    %c0_7 = arith.constant 0 : index
    %4 = vector.load %arg3[%c0_5, %c0_6, %c0_7] : memref<2x1x128xf32, #tpu.memory_space<vmem>>, vector<1x1x128xf32>
    %5 = vector.shape_cast %4 : vector<1x1x128xf32> to vector<1x128xf32>
    %c0_8 = arith.constant 0 : index
    %c0_9 = arith.constant 0 : index
    %c0_10 = arith.constant 0 : index
    %6 = vector.load %arg0[%c0_8, %c0_9, %c0_10] : memref<8x8x32xf32, #tpu.memory_space<vmem>>, vector<8x8x32xf32>
    %7 = vector.shape_cast %6 : vector<8x8x32xf32> to vector<64x32xf32>
    %cst = arith.constant dense<0.000000e+00> : vector<64x128xf32>
    %8 = tpu.matmul %7, %1, %cst {dimension_numbers = #tpu.dot_dimension_numbers<[1], [0], [0], [1], [0, 0, 1, 1], [], []>} : vector<64x32xf32>, vector<32x128xf32>, vector<64x128xf32> -> vector<64x128xf32>
    %9 = vector.broadcast %5 : vector<1x128xf32> to vector<64x128xf32>
    %10 = arith.addf %8, %9 : vector<64x128xf32>
    %11 = vector.shape_cast %10 : vector<64x128xf32> to vector<8x8x128xf32>
    %c0_11 = arith.constant 0 : index
    %c0_12 = arith.constant 0 : index
    %c0_13 = arith.constant 0 : index
    %12 = vector.load %arg6[%c0_11, %c0_12, %c0_13] : memref<8x8x128xf32, #tpu.memory_space<vmem>>, vector<8x8x128xf32>
    tpu.vector_store %arg6[%c0_11, %c0_12, %c0_13], %11 {strides = array<i32>} : memref<8x8x128xf32, #tpu.memory_space<vmem>>, vector<8x8x128xf32>,
    %cst_14 = arith.constant 0.000000e+00 : f32
    %13 = vector.broadcast %cst_14 : f32 to vector<8x32xf32>
    %cst_15 = arith.constant 0.000000e+00 : f32
    %14 = vector.broadcast %cst_15 : f32 to vector<8x32xf32>
    %c0_i32 = arith.constant 0 : i32
    %cst_16 = arith.constant dense<0.000000e+00> : vector<8x128xf32>
    %15 = tpu.matmul %13, %3, %cst_16 {dimension_numbers = #tpu.dot_dimension_numbers<[1], [0], [0], [1], [0, 0, 1, 1], [], []>} : vector<8x32xf32>, vector<32x128xf32>, vector<8x128xf32> -> vector<8x128xf32>
    %16 = arith.index_cast %c0_i32 : i32 to index
    %c0_17 = arith.constant 0 : index
    %c0_18 = arith.constant 0 : index
    %17 = vector.load %arg6[%16, %c0_17, %c0_18] : memref<8x8x128xf32, #tpu.memory_space<vmem>>, vector<1x8x128xf32>
    %18 = vector.shape_cast %17 : vector<1x8x128xf32> to vector<8x128xf32>
    %19 = arith.addf %15, %18 : vector<8x128xf32>
    %20 = vector.extract_strided_slice %19 {offsets = [0, 0], sizes = [8, 32], strides = [1, 1]} : vector<8x128xf32> to vector<8x32xf32>
    %21 = arith.negf %20 : vector<8x32xf32>
    %22 = math.exp %21 : vector<8x32xf32>
    %cst_19 = arith.constant 1.000000e+00 : f32
    %23 = vector.broadcast %cst_19 : f32 to vector<8x32xf32>
    %24 = arith.addf %23, %22 : vector<8x32xf32>
    %25 = arith.divf %23, %24 : vector<8x32xf32>
    %26 = vector.extract_strided_slice %19 {offsets = [0, 32], sizes = [8, 32], strides = [1, 1]} : vector<8x128xf32> to vector<8x32xf32>
    %27 = arith.negf %26 : vector<8x32xf32>
    %28 = math.exp %27 : vector<8x32xf32>
    %cst_20 = arith.constant 1.000000e+00 : f32
    %29 = vector.broadcast %cst_20 : f32 to vector<8x32xf32>
    %30 = arith.addf %29, %28 : vector<8x32xf32>
    %31 = arith.divf %29, %30 : vector<8x32xf32>
    %32 = vector.extract_strided_slice %19 {offsets = [0, 64], sizes = [8, 32], strides = [1, 1]} : vector<8x128xf32> to vector<8x32xf32>
    %33 = math.tanh %32 : vector<8x32xf32>
    %34 = vector.extract_strided_slice %19 {offsets = [0, 96], sizes = [8, 32], strides = [1, 1]} : vector<8x128xf32> to vector<8x32xf32>
    %35 = arith.negf %34 : vector<8x32xf32>
    %36 = math.exp %35 : vector<8x32xf32>
    %cst_21 = arith.constant 1.000000e+00 : f32
    %37 = vector.broadcast %cst_21 : f32 to vector<8x32xf32>
    %38 = arith.addf %37, %36 : vector<8x32xf32>
    %39 = arith.divf %37, %38 : vector<8x32xf32>
    %40 = arith.mulf %31, %14 : vector<8x32xf32>
    %41 = arith.mulf %25, %33 : vector<8x32xf32>
    %42 = arith.addf %40, %41 : vector<8x32xf32>
    %43 = math.tanh %42 : vector<8x32xf32>
    %44 = arith.mulf %39, %43 : vector<8x32xf32>
    %45 = arith.index_cast %c0_i32 : i32 to index
    %c0_22 = arith.constant 0 : index
    %c0_23 = arith.constant 0 : index
    %46 = vector.load %arg5[%45, %c0_22, %c0_23] : memref<8x8x32xf32, #tpu.memory_space<vmem>>, vector<1x8x32xf32>
    %47 = vector.shape_cast %46 : vector<1x8x32xf32> to vector<8x32xf32>
    %48 = vector.shape_cast %44 : vector<8x32xf32> to vector<1x8x32xf32>
    tpu.vector_store %arg5[%45, %c0_22, %c0_23], %48 {strides = array<i32>} : memref<8x8x32xf32, #tpu.memory_space<vmem>>, vector<1x8x32xf32>,
    %c1_i32 = arith.constant 1 : i32
    %cst_24 = arith.constant dense<0.000000e+00> : vector<8x128xf32>
    %49 = tpu.matmul %44, %3, %cst_24 {dimension_numbers = #tpu.dot_dimension_numbers<[1], [0], [0], [1], [0, 0, 1, 1], [], []>} : vector<8x32xf32>, vector<32x128xf32>, vector<8x128xf32> -> vector<8x128xf32>
    %50 = arith.index_cast %c1_i32 : i32 to index
    %c0_25 = arith.constant 0 : index
    %c0_26 = arith.constant 0 : index
    %51 = vector.load %arg6[%50, %c0_25, %c0_26] : memref<8x8x128xf32, #tpu.memory_space<vmem>>, vector<1x8x128xf32>
    %52 = vector.shape_cast %51 : vector<1x8x128xf32> to vector<8x128xf32>
    %53 = arith.addf %49, %52 : vector<8x128xf32>
    %54 = vector.extract_strided_slice %53 {offsets = [0, 0], sizes = [8, 32], strides = [1, 1]} : vector<8x128xf32> to vector<8x32xf32>
    %55 = arith.negf %54 : vector<8x32xf32>
    %56 = math.exp %55 : vector<8x32xf32>
    %cst_27 = arith.constant 1.000000e+00 : f32
    %57 = vector.broadcast %cst_27 : f32 to vector<8x32xf32>
    %58 = arith.addf %57, %56 : vector<8x32xf32>
    %59 = arith.divf %57, %58 : vector<8x32xf32>
    %60 = vector.extract_strided_slice %53 {offsets = [0, 32], sizes = [8, 32], strides = [1, 1]} : vector<8x128xf32> to vector<8x32xf32>
    %61 = arith.negf %60 : vector<8x32xf32>
    %62 = math.exp %61 : vector<8x32xf32>
    %cst_28 = arith.constant 1.000000e+00 : f32
    %63 = vector.broadcast %cst_28 : f32 to vector<8x32xf32>
    %64 = arith.addf %63, %62 : vector<8x32xf32>
    %65 = arith.divf %63, %64 : vector<8x32xf32>
    %66 = vector.extract_strided_slice %53 {offsets = [0, 64], sizes = [8, 32], strides = [1, 1]} : vector<8x128xf32> to vector<8x32xf32>
    %67 = math.tanh %66 : vector<8x32xf32>
    %68 = vector.extract_strided_slice %53 {offsets = [0, 96], sizes = [8, 32], strides = [1, 1]} : vector<8x128xf32> to vector<8x32xf32>
    %69 = arith.negf %68 : vector<8x32xf32>
    %70 = math.exp %69 : vector<8x32xf32>
    %cst_29 = arith.constant 1.000000e+00 : f32
    %71 = vector.broadcast %cst_29 : f32 to vector<8x32xf32>
    %72 = arith.addf %71, %70 : vector<8x32xf32>
    %73 = arith.divf %71, %72 : vector<8x32xf32>
    %74 = arith.mulf %65, %42 : vector<8x32xf32>
    %75 = arith.mulf %59, %67 : vector<8x32xf32>
    %76 = arith.addf %74, %75 : vector<8x32xf32>
    %77 = math.tanh %76 : vector<8x32xf32>
    %78 = arith.mulf %73, %77 : vector<8x32xf32>
    %79 = arith.index_cast %c1_i32 : i32 to index
    %c0_30 = arith.constant 0 : index
    %c0_31 = arith.constant 0 : index
    %80 = vector.load %arg5[%79, %c0_30, %c0_31] : memref<8x8x32xf32, #tpu.memory_space<vmem>>, vector<1x8x32xf32>
    %81 = vector.shape_cast %80 : vector<1x8x32xf32> to vector<8x32xf32>
    %82 = vector.shape_cast %78 : vector<8x32xf32> to vector<1x8x32xf32>
    tpu.vector_store %arg5[%79, %c0_30, %c0_31], %82 {strides = array<i32>} : memref<8x8x32xf32, #tpu.memory_space<vmem>>, vector<1x8x32xf32>,
    %c2_i32 = arith.constant 2 : i32
    %cst_32 = arith.constant dense<0.000000e+00> : vector<8x128xf32>
    %83 = tpu.matmul %78, %3, %cst_32 {dimension_numbers = #tpu.dot_dimension_numbers<[1], [0], [0], [1], [0, 0, 1, 1], [], []>} : vector<8x32xf32>, vector<32x128xf32>, vector<8x128xf32> -> vector<8x128xf32>
    %84 = arith.index_cast %c2_i32 : i32 to index
    %c0_33 = arith.constant 0 : index
    %c0_34 = arith.constant 0 : index
    %85 = vector.load %arg6[%84, %c0_33, %c0_34] : memref<8x8x128xf32, #tpu.memory_space<vmem>>, vector<1x8x128xf32>
    %86 = vector.shape_cast %85 : vector<1x8x128xf32> to vector<8x128xf32>
    %87 = arith.addf %83, %86 : vector<8x128xf32>
    %88 = vector.extract_strided_slice %87 {offsets = [0, 0], sizes = [8, 32], strides = [1, 1]} : vector<8x128xf32> to vector<8x32xf32>
    %89 = arith.negf %88 : vector<8x32xf32>
    %90 = math.exp %89 : vector<8x32xf32>
    %cst_35 = arith.constant 1.000000e+00 : f32
    %91 = vector.broadcast %cst_35 : f32 to vector<8x32xf32>
    %92 = arith.addf %91, %90 : vector<8x32xf32>
    %93 = arith.divf %91, %92 : vector<8x32xf32>
    %94 = vector.extract_strided_slice %87 {offsets = [0, 32], sizes = [8, 32], strides = [1, 1]} : vector<8x128xf32> to vector<8x32xf32>
    %95 = arith.negf %94 : vector<8x32xf32>
    %96 = math.exp %95 : vector<8x32xf32>
    %cst_36 = arith.constant 1.000000e+00 : f32
    %97 = vector.broadcast %cst_36 : f32 to vector<8x32xf32>
    %98 = arith.addf %97, %96 : vector<8x32xf32>
    %99 = arith.divf %97, %98 : vector<8x32xf32>
    %100 = vector.extract_strided_slice %87 {offsets = [0, 64], sizes = [8, 32], strides = [1, 1]} : vector<8x128xf32> to vector<8x32xf32>
    %101 = math.tanh %100 : vector<8x32xf32>
    %102 = vector.extract_strided_slice %87 {offsets = [0, 96], sizes = [8, 32], strides = [1, 1]} : vector<8x128xf32> to vector<8x32xf32>
    %103 = arith.negf %102 : vector<8x32xf32>
    %104 = math.exp %103 : vector<8x32xf32>
    %cst_37 = arith.constant 1.000000e+00 : f32
    %105 = vector.broadcast %cst_37 : f32 to vector<8x32xf32>
    %106 = arith.addf %105, %104 : vector<8x32xf32>
    %107 = arith.divf %105, %106 : vector<8x32xf32>
    %108 = arith.mulf %99, %76 : vector<8x32xf32>
    %109 = arith.mulf %93, %101 : vector<8x32xf32>
    %110 = arith.addf %108, %109 : vector<8x32xf32>
    %111 = math.tanh %110 : vector<8x32xf32>
    %112 = arith.mulf %107, %111 : vector<8x32xf32>
    %113 = arith.index_cast %c2_i32 : i32 to index
    %c0_38 = arith.constant 0 : index
    %c0_39 = arith.constant 0 : index
    %114 = vector.load %arg5[%113, %c0_38, %c0_39] : memref<8x8x32xf32, #tpu.memory_space<vmem>>, vector<1x8x32xf32>
    %115 = vector.shape_cast %114 : vector<1x8x32xf32> to vector<8x32xf32>
    %116 = vector.shape_cast %112 : vector<8x32xf32> to vector<1x8x32xf32>
    tpu.vector_store %arg5[%113, %c0_38, %c0_39], %116 {strides = array<i32>} : memref<8x8x32xf32, #tpu.memory_space<vmem>>, vector<1x8x32xf32>,
    %c3_i32 = arith.constant 3 : i32
    %cst_40 = arith.constant dense<0.000000e+00> : vector<8x128xf32>
    %117 = tpu.matmul %112, %3, %cst_40 {dimension_numbers = #tpu.dot_dimension_numbers<[1], [0], [0], [1], [0, 0, 1, 1], [], []>} : vector<8x32xf32>, vector<32x128xf32>, vector<8x128xf32> -> vector<8x128xf32>
    %118 = arith.index_cast %c3_i32 : i32 to index
    %c0_41 = arith.constant 0 : index
    %c0_42 = arith.constant 0 : index
    %119 = vector.load %arg6[%118, %c0_41, %c0_42] : memref<8x8x128xf32, #tpu.memory_space<vmem>>, vector<1x8x128xf32>
    %120 = vector.shape_cast %119 : vector<1x8x128xf32> to vector<8x128xf32>
    %121 = arith.addf %117, %120 : vector<8x128xf32>
    %122 = vector.extract_strided_slice %121 {offsets = [0, 0], sizes = [8, 32], strides = [1, 1]} : vector<8x128xf32> to vector<8x32xf32>
    %123 = arith.negf %122 : vector<8x32xf32>
    %124 = math.exp %123 : vector<8x32xf32>
    %cst_43 = arith.constant 1.000000e+00 : f32
    %125 = vector.broadcast %cst_43 : f32 to vector<8x32xf32>
    %126 = arith.addf %125, %124 : vector<8x32xf32>
    %127 = arith.divf %125, %126 : vector<8x32xf32>
    %128 = vector.extract_strided_slice %121 {offsets = [0, 32], sizes = [8, 32], strides = [1, 1]} : vector<8x128xf32> to vector<8x32xf32>
    %129 = arith.negf %128 : vector<8x32xf32>
    %130 = math.exp %129 : vector<8x32xf32>
    %cst_44 = arith.constant 1.000000e+00 : f32
    %131 = vector.broadcast %cst_44 : f32 to vector<8x32xf32>
    %132 = arith.addf %131, %130 : vector<8x32xf32>
    %133 = arith.divf %131, %132 : vector<8x32xf32>
    %134 = vector.extract_strided_slice %121 {offsets = [0, 64], sizes = [8, 32], strides = [1, 1]} : vector<8x128xf32> to vector<8x32xf32>
    %135 = math.tanh %134 : vector<8x32xf32>
    %136 = vector.extract_strided_slice %121 {offsets = [0, 96], sizes = [8, 32], strides = [1, 1]} : vector<8x128xf32> to vector<8x32xf32>
    %137 = arith.negf %136 : vector<8x32xf32>
    %138 = math.exp %137 : vector<8x32xf32>
    %cst_45 = arith.constant 1.000000e+00 : f32
    %139 = vector.broadcast %cst_45 : f32 to vector<8x32xf32>
    %140 = arith.addf %139, %138 : vector<8x32xf32>
    %141 = arith.divf %139, %140 : vector<8x32xf32>
    %142 = arith.mulf %133, %110 : vector<8x32xf32>
    %143 = arith.mulf %127, %135 : vector<8x32xf32>
    %144 = arith.addf %142, %143 : vector<8x32xf32>
    %145 = math.tanh %144 : vector<8x32xf32>
    %146 = arith.mulf %141, %145 : vector<8x32xf32>
    %147 = arith.index_cast %c3_i32 : i32 to index
    %c0_46 = arith.constant 0 : index
    %c0_47 = arith.constant 0 : index
    %148 = vector.load %arg5[%147, %c0_46, %c0_47] : memref<8x8x32xf32, #tpu.memory_space<vmem>>, vector<1x8x32xf32>
    %149 = vector.shape_cast %148 : vector<1x8x32xf32> to vector<8x32xf32>
    %150 = vector.shape_cast %146 : vector<8x32xf32> to vector<1x8x32xf32>
    tpu.vector_store %arg5[%147, %c0_46, %c0_47], %150 {strides = array<i32>} : memref<8x8x32xf32, #tpu.memory_space<vmem>>, vector<1x8x32xf32>,
    %c4_i32 = arith.constant 4 : i32
    %cst_48 = arith.constant dense<0.000000e+00> : vector<8x128xf32>
    %151 = tpu.matmul %146, %3, %cst_48 {dimension_numbers = #tpu.dot_dimension_numbers<[1], [0], [0], [1], [0, 0, 1, 1], [], []>} : vector<8x32xf32>, vector<32x128xf32>, vector<8x128xf32> -> vector<8x128xf32>
    %152 = arith.index_cast %c4_i32 : i32 to index
    %c0_49 = arith.constant 0 : index
    %c0_50 = arith.constant 0 : index
    %153 = vector.load %arg6[%152, %c0_49, %c0_50] : memref<8x8x128xf32, #tpu.memory_space<vmem>>, vector<1x8x128xf32>
    %154 = vector.shape_cast %153 : vector<1x8x128xf32> to vector<8x128xf32>
    %155 = arith.addf %151, %154 : vector<8x128xf32>
    %156 = vector.extract_strided_slice %155 {offsets = [0, 0], sizes = [8, 32], strides = [1, 1]} : vector<8x128xf32> to vector<8x32xf32>
    %157 = arith.negf %156 : vector<8x32xf32>
    %158 = math.exp %157 : vector<8x32xf32>
    %cst_51 = arith.constant 1.000000e+00 : f32
    %159 = vector.broadcast %cst_51 : f32 to vector<8x32xf32>
    %160 = arith.addf %159, %158 : vector<8x32xf32>
    %161 = arith.divf %159, %160 : vector<8x32xf32>
    %162 = vector.extract_strided_slice %155 {offsets = [0, 32], sizes = [8, 32], strides = [1, 1]} : vector<8x128xf32> to vector<8x32xf32>
    %163 = arith.negf %162 : vector<8x32xf32>
    %164 = math.exp %163 : vector<8x32xf32>
    %cst_52 = arith.constant 1.000000e+00 : f32
    %165 = vector.broadcast %cst_52 : f32 to vector<8x32xf32>
    %166 = arith.addf %165, %164 : vector<8x32xf32>
    %167 = arith.divf %165, %166 : vector<8x32xf32>
    %168 = vector.extract_strided_slice %155 {offsets = [0, 64], sizes = [8, 32], strides = [1, 1]} : vector<8x128xf32> to vector<8x32xf32>
    %169 = math.tanh %168 : vector<8x32xf32>
    %170 = vector.extract_strided_slice %155 {offsets = [0, 96], sizes = [8, 32], strides = [1, 1]} : vector<8x128xf32> to vector<8x32xf32>
    %171 = arith.negf %170 : vector<8x32xf32>
    %172 = math.exp %171 : vector<8x32xf32>
    %cst_53 = arith.constant 1.000000e+00 : f32
    %173 = vector.broadcast %cst_53 : f32 to vector<8x32xf32>
    %174 = arith.addf %173, %172 : vector<8x32xf32>
    %175 = arith.divf %173, %174 : vector<8x32xf32>
    %176 = arith.mulf %167, %144 : vector<8x32xf32>
    %177 = arith.mulf %161, %169 : vector<8x32xf32>
    %178 = arith.addf %176, %177 : vector<8x32xf32>
    %179 = math.tanh %178 : vector<8x32xf32>
    %180 = arith.mulf %175, %179 : vector<8x32xf32>
    %181 = arith.index_cast %c4_i32 : i32 to index
    %c0_54 = arith.constant 0 : index
    %c0_55 = arith.constant 0 : index
    %182 = vector.load %arg5[%181, %c0_54, %c0_55] : memref<8x8x32xf32, #tpu.memory_space<vmem>>, vector<1x8x32xf32>
    %183 = vector.shape_cast %182 : vector<1x8x32xf32> to vector<8x32xf32>
    %184 = vector.shape_cast %180 : vector<8x32xf32> to vector<1x8x32xf32>
    tpu.vector_store %arg5[%181, %c0_54, %c0_55], %184 {strides = array<i32>} : memref<8x8x32xf32, #tpu.memory_space<vmem>>, vector<1x8x32xf32>,
    %c5_i32 = arith.constant 5 : i32
    %cst_56 = arith.constant dense<0.000000e+00> : vector<8x128xf32>
    %185 = tpu.matmul %180, %3, %cst_56 {dimension_numbers = #tpu.dot_dimension_numbers<[1], [0], [0], [1], [0, 0, 1, 1], [], []>} : vector<8x32xf32>, vector<32x128xf32>, vector<8x128xf32> -> vector<8x128xf32>
    %186 = arith.index_cast %c5_i32 : i32 to index
    %c0_57 = arith.constant 0 : index
    %c0_58 = arith.constant 0 : index
    %187 = vector.load %arg6[%186, %c0_57, %c0_58] : memref<8x8x128xf32, #tpu.memory_space<vmem>>, vector<1x8x128xf32>
    %188 = vector.shape_cast %187 : vector<1x8x128xf32> to vector<8x128xf32>
    %189 = arith.addf %185, %188 : vector<8x128xf32>
    %190 = vector.extract_strided_slice %189 {offsets = [0, 0], sizes = [8, 32], strides = [1, 1]} : vector<8x128xf32> to vector<8x32xf32>
    %191 = arith.negf %190 : vector<8x32xf32>
    %192 = math.exp %191 : vector<8x32xf32>
    %cst_59 = arith.constant 1.000000e+00 : f32
    %193 = vector.broadcast %cst_59 : f32 to vector<8x32xf32>
    %194 = arith.addf %193, %192 : vector<8x32xf32>
    %195 = arith.divf %193, %194 : vector<8x32xf32>
    %196 = vector.extract_strided_slice %189 {offsets = [0, 32], sizes = [8, 32], strides = [1, 1]} : vector<8x128xf32> to vector<8x32xf32>
    %197 = arith.negf %196 : vector<8x32xf32>
    %198 = math.exp %197 : vector<8x32xf32>
    %cst_60 = arith.constant 1.000000e+00 : f32
    %199 = vector.broadcast %cst_60 : f32 to vector<8x32xf32>
    %200 = arith.addf %199, %198 : vector<8x32xf32>
    %201 = arith.divf %199, %200 : vector<8x32xf32>
    %202 = vector.extract_strided_slice %189 {offsets = [0, 64], sizes = [8, 32], strides = [1, 1]} : vector<8x128xf32> to vector<8x32xf32>
    %203 = math.tanh %202 : vector<8x32xf32>
    %204 = vector.extract_strided_slice %189 {offsets = [0, 96], sizes = [8, 32], strides = [1, 1]} : vector<8x128xf32> to vector<8x32xf32>
    %205 = arith.negf %204 : vector<8x32xf32>
    %206 = math.exp %205 : vector<8x32xf32>
    %cst_61 = arith.constant 1.000000e+00 : f32
    %207 = vector.broadcast %cst_61 : f32 to vector<8x32xf32>
    %208 = arith.addf %207, %206 : vector<8x32xf32>
    %209 = arith.divf %207, %208 : vector<8x32xf32>
    %210 = arith.mulf %201, %178 : vector<8x32xf32>
    %211 = arith.mulf %195, %203 : vector<8x32xf32>
    %212 = arith.addf %210, %211 : vector<8x32xf32>
    %213 = math.tanh %212 : vector<8x32xf32>
    %214 = arith.mulf %209, %213 : vector<8x32xf32>
    %215 = arith.index_cast %c5_i32 : i32 to index
    %c0_62 = arith.constant 0 : index
    %c0_63 = arith.constant 0 : index
    %216 = vector.load %arg5[%215, %c0_62, %c0_63] : memref<8x8x32xf32, #tpu.memory_space<vmem>>, vector<1x8x32xf32>
    %217 = vector.shape_cast %216 : vector<1x8x32xf32> to vector<8x32xf32>
    %218 = vector.shape_cast %214 : vector<8x32xf32> to vector<1x8x32xf32>
    tpu.vector_store %arg5[%215, %c0_62, %c0_63], %218 {strides = array<i32>} : memref<8x8x32xf32, #tpu.memory_space<vmem>>, vector<1x8x32xf32>,
    %c6_i32 = arith.constant 6 : i32
    %cst_64 = arith.constant dense<0.000000e+00> : vector<8x128xf32>
    %219 = tpu.matmul %214, %3, %cst_64 {dimension_numbers = #tpu.dot_dimension_numbers<[1], [0], [0], [1], [0, 0, 1, 1], [], []>} : vector<8x32xf32>, vector<32x128xf32>, vector<8x128xf32> -> vector<8x128xf32>
    %220 = arith.index_cast %c6_i32 : i32 to index
    %c0_65 = arith.constant 0 : index
    %c0_66 = arith.constant 0 : index
    %221 = vector.load %arg6[%220, %c0_65, %c0_66] : memref<8x8x128xf32, #tpu.memory_space<vmem>>, vector<1x8x128xf32>
    %222 = vector.shape_cast %221 : vector<1x8x128xf32> to vector<8x128xf32>
    %223 = arith.addf %219, %222 : vector<8x128xf32>
    %224 = vector.extract_strided_slice %223 {offsets = [0, 0], sizes = [8, 32], strides = [1, 1]} : vector<8x128xf32> to vector<8x32xf32>
    %225 = arith.negf %224 : vector<8x32xf32>
    %226 = math.exp %225 : vector<8x32xf32>
    %cst_67 = arith.constant 1.000000e+00 : f32
    %227 = vector.broadcast %cst_67 : f32 to vector<8x32xf32>
    %228 = arith.addf %227, %226 : vector<8x32xf32>
    %229 = arith.divf %227, %228 : vector<8x32xf32>
    %230 = vector.extract_strided_slice %223 {offsets = [0, 32], sizes = [8, 32], strides = [1, 1]} : vector<8x128xf32> to vector<8x32xf32>
    %231 = arith.negf %230 : vector<8x32xf32>
    %232 = math.exp %231 : vector<8x32xf32>
    %cst_68 = arith.constant 1.000000e+00 : f32
    %233 = vector.broadcast %cst_68 : f32 to vector<8x32xf32>
    %234 = arith.addf %233, %232 : vector<8x32xf32>
    %235 = arith.divf %233, %234 : vector<8x32xf32>
    %236 = vector.extract_strided_slice %223 {offsets = [0, 64], sizes = [8, 32], strides = [1, 1]} : vector<8x128xf32> to vector<8x32xf32>
    %237 = math.tanh %236 : vector<8x32xf32>
    %238 = vector.extract_strided_slice %223 {offsets = [0, 96], sizes = [8, 32], strides = [1, 1]} : vector<8x128xf32> to vector<8x32xf32>
    %239 = arith.negf %238 : vector<8x32xf32>
    %240 = math.exp %239 : vector<8x32xf32>
    %cst_69 = arith.constant 1.000000e+00 : f32
    %241 = vector.broadcast %cst_69 : f32 to vector<8x32xf32>
    %242 = arith.addf %241, %240 : vector<8x32xf32>
    %243 = arith.divf %241, %242 : vector<8x32xf32>
    %244 = arith.mulf %235, %212 : vector<8x32xf32>
    %245 = arith.mulf %229, %237 : vector<8x32xf32>
    %246 = arith.addf %244, %245 : vector<8x32xf32>
    %247 = math.tanh %246 : vector<8x32xf32>
    %248 = arith.mulf %243, %247 : vector<8x32xf32>
    %249 = arith.index_cast %c6_i32 : i32 to index
    %c0_70 = arith.constant 0 : index
    %c0_71 = arith.constant 0 : index
    %250 = vector.load %arg5[%249, %c0_70, %c0_71] : memref<8x8x32xf32, #tpu.memory_space<vmem>>, vector<1x8x32xf32>
    %251 = vector.shape_cast %250 : vector<1x8x32xf32> to vector<8x32xf32>
    %252 = vector.shape_cast %248 : vector<8x32xf32> to vector<1x8x32xf32>
    tpu.vector_store %arg5[%249, %c0_70, %c0_71], %252 {strides = array<i32>} : memref<8x8x32xf32, #tpu.memory_space<vmem>>, vector<1x8x32xf32>,
    %c7_i32 = arith.constant 7 : i32
    %cst_72 = arith.constant dense<0.000000e+00> : vector<8x128xf32>
    %253 = tpu.matmul %248, %3, %cst_72 {dimension_numbers = #tpu.dot_dimension_numbers<[1], [0], [0], [1], [0, 0, 1, 1], [], []>} : vector<8x32xf32>, vector<32x128xf32>, vector<8x128xf32> -> vector<8x128xf32>
    %254 = arith.index_cast %c7_i32 : i32 to index
    %c0_73 = arith.constant 0 : index
    %c0_74 = arith.constant 0 : index
    %255 = vector.load %arg6[%254, %c0_73, %c0_74] : memref<8x8x128xf32, #tpu.memory_space<vmem>>, vector<1x8x128xf32>
    %256 = vector.shape_cast %255 : vector<1x8x128xf32> to vector<8x128xf32>
    %257 = arith.addf %253, %256 : vector<8x128xf32>
    %258 = vector.extract_strided_slice %257 {offsets = [0, 0], sizes = [8, 32], strides = [1, 1]} : vector<8x128xf32> to vector<8x32xf32>
    %259 = arith.negf %258 : vector<8x32xf32>
    %260 = math.exp %259 : vector<8x32xf32>
    %cst_75 = arith.constant 1.000000e+00 : f32
    %261 = vector.broadcast %cst_75 : f32 to vector<8x32xf32>
    %262 = arith.addf %261, %260 : vector<8x32xf32>
    %263 = arith.divf %261, %262 : vector<8x32xf32>
    %264 = vector.extract_strided_slice %257 {offsets = [0, 32], sizes = [8, 32], strides = [1, 1]} : vector<8x128xf32> to vector<8x32xf32>
    %265 = arith.negf %264 : vector<8x32xf32>
    %266 = math.exp %265 : vector<8x32xf32>
    %cst_76 = arith.constant 1.000000e+00 : f32
    %267 = vector.broadcast %cst_76 : f32 to vector<8x32xf32>
    %268 = arith.addf %267, %266 : vector<8x32xf32>
    %269 = arith.divf %267, %268 : vector<8x32xf32>
    %270 = vector.extract_strided_slice %257 {offsets = [0, 64], sizes = [8, 32], strides = [1, 1]} : vector<8x128xf32> to vector<8x32xf32>
    %271 = math.tanh %270 : vector<8x32xf32>
    %272 = vector.extract_strided_slice %257 {offsets = [0, 96], sizes = [8, 32], strides = [1, 1]} : vector<8x128xf32> to vector<8x32xf32>
    %273 = arith.negf %272 : vector<8x32xf32>
    %274 = math.exp %273 : vector<8x32xf32>
    %cst_77 = arith.constant 1.000000e+00 : f32
    %275 = vector.broadcast %cst_77 : f32 to vector<8x32xf32>
    %276 = arith.addf %275, %274 : vector<8x32xf32>
    %277 = arith.divf %275, %276 : vector<8x32xf32>
    %278 = arith.mulf %269, %246 : vector<8x32xf32>
    %279 = arith.mulf %263, %271 : vector<8x32xf32>
    %280 = arith.addf %278, %279 : vector<8x32xf32>
    %281 = math.tanh %280 : vector<8x32xf32>
    %282 = arith.mulf %277, %281 : vector<8x32xf32>
    %283 = arith.index_cast %c7_i32 : i32 to index
    %c0_78 = arith.constant 0 : index
    %c0_79 = arith.constant 0 : index
    %284 = vector.load %arg5[%283, %c0_78, %c0_79] : memref<8x8x32xf32, #tpu.memory_space<vmem>>, vector<1x8x32xf32>
    %285 = vector.shape_cast %284 : vector<1x8x32xf32> to vector<8x32xf32>
    %286 = vector.shape_cast %282 : vector<8x32xf32> to vector<1x8x32xf32>
    tpu.vector_store %arg5[%283, %c0_78, %c0_79], %286 {strides = array<i32>} : memref<8x8x32xf32, #tpu.memory_space<vmem>>, vector<1x8x32xf32>,
    %c8_i32 = arith.constant 8 : i32
    %c1 = arith.constant 1 : index
    %c0_80 = arith.constant 0 : index
    %c0_81 = arith.constant 0 : index
    %287 = vector.load %arg1[%c1, %c0_80, %c0_81] : memref<2x32x128xf32, #tpu.memory_space<vmem>>, vector<1x32x128xf32>
    %288 = vector.shape_cast %287 : vector<1x32x128xf32> to vector<32x128xf32>
    %c1_82 = arith.constant 1 : index
    %c0_83 = arith.constant 0 : index
    %c0_84 = arith.constant 0 : index
    %289 = vector.load %arg2[%c1_82, %c0_83, %c0_84] : memref<2x32x128xf32, #tpu.memory_space<vmem>>, vector<1x32x128xf32>
    %290 = vector.shape_cast %289 : vector<1x32x128xf32> to vector<32x128xf32>
    %c1_85 = arith.constant 1 : index
    %c0_86 = arith.constant 0 : index
    %c0_87 = arith.constant 0 : index
    %291 = vector.load %arg3[%c1_85, %c0_86, %c0_87] : memref<2x1x128xf32, #tpu.memory_space<vmem>>, vector<1x1x128xf32>
    %292 = vector.shape_cast %291 : vector<1x1x128xf32> to vector<1x128xf32>
    %c0_88 = arith.constant 0 : index
    %c0_89 = arith.constant 0 : index
    %c0_90 = arith.constant 0 : index
    %293 = vector.load %arg5[%c0_88, %c0_89, %c0_90] : memref<8x8x32xf32, #tpu.memory_space<vmem>>, vector<8x8x32xf32>
    %294 = vector.shape_cast %293 : vector<8x8x32xf32> to vector<64x32xf32>
    %cst_91 = arith.constant dense<0.000000e+00> : vector<64x128xf32>
    %295 = tpu.matmul %294, %288, %cst_91 {dimension_numbers = #tpu.dot_dimension_numbers<[1], [0], [0], [1], [0, 0, 1, 1], [], []>} : vector<64x32xf32>, vector<32x128xf32>, vector<64x128xf32> -> vector<64x128xf32>
    %296 = vector.broadcast %292 : vector<1x128xf32> to vector<64x128xf32>
    %297 = arith.addf %295, %296 : vector<64x128xf32>
    %298 = vector.shape_cast %297 : vector<64x128xf32> to vector<8x8x128xf32>
    %c0_92 = arith.constant 0 : index
    %c0_93 = arith.constant 0 : index
    %c0_94 = arith.constant 0 : index
    %299 = vector.load %arg6[%c0_92, %c0_93, %c0_94] : memref<8x8x128xf32, #tpu.memory_space<vmem>>, vector<8x8x128xf32>
    tpu.vector_store %arg6[%c0_92, %c0_93, %c0_94], %298 {strides = array<i32>} : memref<8x8x128xf32, #tpu.memory_space<vmem>>, vector<8x8x128xf32>,
    %cst_95 = arith.constant 0.000000e+00 : f32
    %300 = vector.broadcast %cst_95 : f32 to vector<8x32xf32>
    %cst_96 = arith.constant 0.000000e+00 : f32
    %301 = vector.broadcast %cst_96 : f32 to vector<8x32xf32>
    %c0_i32_97 = arith.constant 0 : i32
    %cst_98 = arith.constant dense<0.000000e+00> : vector<8x128xf32>
    %302 = tpu.matmul %300, %290, %cst_98 {dimension_numbers = #tpu.dot_dimension_numbers<[1], [0], [0], [1], [0, 0, 1, 1], [], []>} : vector<8x32xf32>, vector<32x128xf32>, vector<8x128xf32> -> vector<8x128xf32>
    %303 = arith.index_cast %c0_i32_97 : i32 to index
    %c0_99 = arith.constant 0 : index
    %c0_100 = arith.constant 0 : index
    %304 = vector.load %arg6[%303, %c0_99, %c0_100] : memref<8x8x128xf32, #tpu.memory_space<vmem>>, vector<1x8x128xf32>
    %305 = vector.shape_cast %304 : vector<1x8x128xf32> to vector<8x128xf32>
    %306 = arith.addf %302, %305 : vector<8x128xf32>
    %307 = vector.extract_strided_slice %306 {offsets = [0, 0], sizes = [8, 32], strides = [1, 1]} : vector<8x128xf32> to vector<8x32xf32>
    %308 = arith.negf %307 : vector<8x32xf32>
    %309 = math.exp %308 : vector<8x32xf32>
    %cst_101 = arith.constant 1.000000e+00 : f32
    %310 = vector.broadcast %cst_101 : f32 to vector<8x32xf32>
    %311 = arith.addf %310, %309 : vector<8x32xf32>
    %312 = arith.divf %310, %311 : vector<8x32xf32>
    %313 = vector.extract_strided_slice %306 {offsets = [0, 32], sizes = [8, 32], strides = [1, 1]} : vector<8x128xf32> to vector<8x32xf32>
    %314 = arith.negf %313 : vector<8x32xf32>
    %315 = math.exp %314 : vector<8x32xf32>
    %cst_102 = arith.constant 1.000000e+00 : f32
    %316 = vector.broadcast %cst_102 : f32 to vector<8x32xf32>
    %317 = arith.addf %316, %315 : vector<8x32xf32>
    %318 = arith.divf %316, %317 : vector<8x32xf32>
    %319 = vector.extract_strided_slice %306 {offsets = [0, 64], sizes = [8, 32], strides = [1, 1]} : vector<8x128xf32> to vector<8x32xf32>
    %320 = math.tanh %319 : vector<8x32xf32>
    %321 = vector.extract_strided_slice %306 {offsets = [0, 96], sizes = [8, 32], strides = [1, 1]} : vector<8x128xf32> to vector<8x32xf32>
    %322 = arith.negf %321 : vector<8x32xf32>
    %323 = math.exp %322 : vector<8x32xf32>
    %cst_103 = arith.constant 1.000000e+00 : f32
    %324 = vector.broadcast %cst_103 : f32 to vector<8x32xf32>
    %325 = arith.addf %324, %323 : vector<8x32xf32>
    %326 = arith.divf %324, %325 : vector<8x32xf32>
    %327 = arith.mulf %318, %301 : vector<8x32xf32>
    %328 = arith.mulf %312, %320 : vector<8x32xf32>
    %329 = arith.addf %327, %328 : vector<8x32xf32>
    %330 = math.tanh %329 : vector<8x32xf32>
    %331 = arith.mulf %326, %330 : vector<8x32xf32>
    %332 = arith.index_cast %c0_i32_97 : i32 to index
    %c0_104 = arith.constant 0 : index
    %c0_105 = arith.constant 0 : index
    %333 = vector.load %arg0[%332, %c0_104, %c0_105] : memref<8x8x32xf32, #tpu.memory_space<vmem>>, vector<1x8x32xf32>
    %334 = vector.shape_cast %333 : vector<1x8x32xf32> to vector<8x32xf32>
    %335 = arith.addf %331, %334 : vector<8x32xf32>
    %336 = arith.index_cast %c0_i32_97 : i32 to index
    %c0_106 = arith.constant 0 : index
    %c0_107 = arith.constant 0 : index
    %337 = vector.load %arg4[%336, %c0_106, %c0_107] : memref<8x8x32xf32, #tpu.memory_space<vmem>>, vector<1x8x32xf32>
    %338 = vector.shape_cast %337 : vector<1x8x32xf32> to vector<8x32xf32>
    %339 = vector.shape_cast %335 : vector<8x32xf32> to vector<1x8x32xf32>
    tpu.vector_store %arg4[%336, %c0_106, %c0_107], %339 {strides = array<i32>} : memref<8x8x32xf32, #tpu.memory_space<vmem>>, vector<1x8x32xf32>,
    %c1_i32_108 = arith.constant 1 : i32
    %cst_109 = arith.constant dense<0.000000e+00> : vector<8x128xf32>
    %340 = tpu.matmul %331, %290, %cst_109 {dimension_numbers = #tpu.dot_dimension_numbers<[1], [0], [0], [1], [0, 0, 1, 1], [], []>} : vector<8x32xf32>, vector<32x128xf32>, vector<8x128xf32> -> vector<8x128xf32>
    %341 = arith.index_cast %c1_i32_108 : i32 to index
    %c0_110 = arith.constant 0 : index
    %c0_111 = arith.constant 0 : index
    %342 = vector.load %arg6[%341, %c0_110, %c0_111] : memref<8x8x128xf32, #tpu.memory_space<vmem>>, vector<1x8x128xf32>
    %343 = vector.shape_cast %342 : vector<1x8x128xf32> to vector<8x128xf32>
    %344 = arith.addf %340, %343 : vector<8x128xf32>
    %345 = vector.extract_strided_slice %344 {offsets = [0, 0], sizes = [8, 32], strides = [1, 1]} : vector<8x128xf32> to vector<8x32xf32>
    %346 = arith.negf %345 : vector<8x32xf32>
    %347 = math.exp %346 : vector<8x32xf32>
    %cst_112 = arith.constant 1.000000e+00 : f32
    %348 = vector.broadcast %cst_112 : f32 to vector<8x32xf32>
    %349 = arith.addf %348, %347 : vector<8x32xf32>
    %350 = arith.divf %348, %349 : vector<8x32xf32>
    %351 = vector.extract_strided_slice %344 {offsets = [0, 32], sizes = [8, 32], strides = [1, 1]} : vector<8x128xf32> to vector<8x32xf32>
    %352 = arith.negf %351 : vector<8x32xf32>
    %353 = math.exp %352 : vector<8x32xf32>
    %cst_113 = arith.constant 1.000000e+00 : f32
    %354 = vector.broadcast %cst_113 : f32 to vector<8x32xf32>
    %355 = arith.addf %354, %353 : vector<8x32xf32>
    %356 = arith.divf %354, %355 : vector<8x32xf32>
    %357 = vector.extract_strided_slice %344 {offsets = [0, 64], sizes = [8, 32], strides = [1, 1]} : vector<8x128xf32> to vector<8x32xf32>
    %358 = math.tanh %357 : vector<8x32xf32>
    %359 = vector.extract_strided_slice %344 {offsets = [0, 96], sizes = [8, 32], strides = [1, 1]} : vector<8x128xf32> to vector<8x32xf32>
    %360 = arith.negf %359 : vector<8x32xf32>
    %361 = math.exp %360 : vector<8x32xf32>
    %cst_114 = arith.constant 1.000000e+00 : f32
    %362 = vector.broadcast %cst_114 : f32 to vector<8x32xf32>
    %363 = arith.addf %362, %361 : vector<8x32xf32>
    %364 = arith.divf %362, %363 : vector<8x32xf32>
    %365 = arith.mulf %356, %329 : vector<8x32xf32>
    %366 = arith.mulf %350, %358 : vector<8x32xf32>
    %367 = arith.addf %365, %366 : vector<8x32xf32>
    %368 = math.tanh %367 : vector<8x32xf32>
    %369 = arith.mulf %364, %368 : vector<8x32xf32>
    %370 = arith.index_cast %c1_i32_108 : i32 to index
    %c0_115 = arith.constant 0 : index
    %c0_116 = arith.constant 0 : index
    %371 = vector.load %arg0[%370, %c0_115, %c0_116] : memref<8x8x32xf32, #tpu.memory_space<vmem>>, vector<1x8x32xf32>
    %372 = vector.shape_cast %371 : vector<1x8x32xf32> to vector<8x32xf32>
    %373 = arith.addf %369, %372 : vector<8x32xf32>
    %374 = arith.index_cast %c1_i32_108 : i32 to index
    %c0_117 = arith.constant 0 : index
    %c0_118 = arith.constant 0 : index
    %375 = vector.load %arg4[%374, %c0_117, %c0_118] : memref<8x8x32xf32, #tpu.memory_space<vmem>>, vector<1x8x32xf32>
    %376 = vector.shape_cast %375 : vector<1x8x32xf32> to vector<8x32xf32>
    %377 = vector.shape_cast %373 : vector<8x32xf32> to vector<1x8x32xf32>
    tpu.vector_store %arg4[%374, %c0_117, %c0_118], %377 {strides = array<i32>} : memref<8x8x32xf32, #tpu.memory_space<vmem>>, vector<1x8x32xf32>,
    %c2_i32_119 = arith.constant 2 : i32
    %cst_120 = arith.constant dense<0.000000e+00> : vector<8x128xf32>
    %378 = tpu.matmul %369, %290, %cst_120 {dimension_numbers = #tpu.dot_dimension_numbers<[1], [0], [0], [1], [0, 0, 1, 1], [], []>} : vector<8x32xf32>, vector<32x128xf32>, vector<8x128xf32> -> vector<8x128xf32>
    %379 = arith.index_cast %c2_i32_119 : i32 to index
    %c0_121 = arith.constant 0 : index
    %c0_122 = arith.constant 0 : index
    %380 = vector.load %arg6[%379, %c0_121, %c0_122] : memref<8x8x128xf32, #tpu.memory_space<vmem>>, vector<1x8x128xf32>
    %381 = vector.shape_cast %380 : vector<1x8x128xf32> to vector<8x128xf32>
    %382 = arith.addf %378, %381 : vector<8x128xf32>
    %383 = vector.extract_strided_slice %382 {offsets = [0, 0], sizes = [8, 32], strides = [1, 1]} : vector<8x128xf32> to vector<8x32xf32>
    %384 = arith.negf %383 : vector<8x32xf32>
    %385 = math.exp %384 : vector<8x32xf32>
    %cst_123 = arith.constant 1.000000e+00 : f32
    %386 = vector.broadcast %cst_123 : f32 to vector<8x32xf32>
    %387 = arith.addf %386, %385 : vector<8x32xf32>
    %388 = arith.divf %386, %387 : vector<8x32xf32>
    %389 = vector.extract_strided_slice %382 {offsets = [0, 32], sizes = [8, 32], strides = [1, 1]} : vector<8x128xf32> to vector<8x32xf32>
    %390 = arith.negf %389 : vector<8x32xf32>
    %391 = math.exp %390 : vector<8x32xf32>
    %cst_124 = arith.constant 1.000000e+00 : f32
    %392 = vector.broadcast %cst_124 : f32 to vector<8x32xf32>
    %393 = arith.addf %392, %391 : vector<8x32xf32>
    %394 = arith.divf %392, %393 : vector<8x32xf32>
    %395 = vector.extract_strided_slice %382 {offsets = [0, 64], sizes = [8, 32], strides = [1, 1]} : vector<8x128xf32> to vector<8x32xf32>
    %396 = math.tanh %395 : vector<8x32xf32>
    %397 = vector.extract_strided_slice %382 {offsets = [0, 96], sizes = [8, 32], strides = [1, 1]} : vector<8x128xf32> to vector<8x32xf32>
    %398 = arith.negf %397 : vector<8x32xf32>
    %399 = math.exp %398 : vector<8x32xf32>
    %cst_125 = arith.constant 1.000000e+00 : f32
    %400 = vector.broadcast %cst_125 : f32 to vector<8x32xf32>
    %401 = arith.addf %400, %399 : vector<8x32xf32>
    %402 = arith.divf %400, %401 : vector<8x32xf32>
    %403 = arith.mulf %394, %367 : vector<8x32xf32>
    %404 = arith.mulf %388, %396 : vector<8x32xf32>
    %405 = arith.addf %403, %404 : vector<8x32xf32>
    %406 = math.tanh %405 : vector<8x32xf32>
    %407 = arith.mulf %402, %406 : vector<8x32xf32>
    %408 = arith.index_cast %c2_i32_119 : i32 to index
    %c0_126 = arith.constant 0 : index
    %c0_127 = arith.constant 0 : index
    %409 = vector.load %arg0[%408, %c0_126, %c0_127] : memref<8x8x32xf32, #tpu.memory_space<vmem>>, vector<1x8x32xf32>
    %410 = vector.shape_cast %409 : vector<1x8x32xf32> to vector<8x32xf32>
    %411 = arith.addf %407, %410 : vector<8x32xf32>
    %412 = arith.index_cast %c2_i32_119 : i32 to index
    %c0_128 = arith.constant 0 : index
    %c0_129 = arith.constant 0 : index
    %413 = vector.load %arg4[%412, %c0_128, %c0_129] : memref<8x8x32xf32, #tpu.memory_space<vmem>>, vector<1x8x32xf32>
    %414 = vector.shape_cast %413 : vector<1x8x32xf32> to vector<8x32xf32>
    %415 = vector.shape_cast %411 : vector<8x32xf32> to vector<1x8x32xf32>
    tpu.vector_store %arg4[%412, %c0_128, %c0_129], %415 {strides = array<i32>} : memref<8x8x32xf32, #tpu.memory_space<vmem>>, vector<1x8x32xf32>,
    %c3_i32_130 = arith.constant 3 : i32
    %cst_131 = arith.constant dense<0.000000e+00> : vector<8x128xf32>
    %416 = tpu.matmul %407, %290, %cst_131 {dimension_numbers = #tpu.dot_dimension_numbers<[1], [0], [0], [1], [0, 0, 1, 1], [], []>} : vector<8x32xf32>, vector<32x128xf32>, vector<8x128xf32> -> vector<8x128xf32>
    %417 = arith.index_cast %c3_i32_130 : i32 to index
    %c0_132 = arith.constant 0 : index
    %c0_133 = arith.constant 0 : index
    %418 = vector.load %arg6[%417, %c0_132, %c0_133] : memref<8x8x128xf32, #tpu.memory_space<vmem>>, vector<1x8x128xf32>
    %419 = vector.shape_cast %418 : vector<1x8x128xf32> to vector<8x128xf32>
    %420 = arith.addf %416, %419 : vector<8x128xf32>
    %421 = vector.extract_strided_slice %420 {offsets = [0, 0], sizes = [8, 32], strides = [1, 1]} : vector<8x128xf32> to vector<8x32xf32>
    %422 = arith.negf %421 : vector<8x32xf32>
    %423 = math.exp %422 : vector<8x32xf32>
    %cst_134 = arith.constant 1.000000e+00 : f32
    %424 = vector.broadcast %cst_134 : f32 to vector<8x32xf32>
    %425 = arith.addf %424, %423 : vector<8x32xf32>
    %426 = arith.divf %424, %425 : vector<8x32xf32>
    %427 = vector.extract_strided_slice %420 {offsets = [0, 32], sizes = [8, 32], strides = [1, 1]} : vector<8x128xf32> to vector<8x32xf32>
    %428 = arith.negf %427 : vector<8x32xf32>
    %429 = math.exp %428 : vector<8x32xf32>
    %cst_135 = arith.constant 1.000000e+00 : f32
    %430 = vector.broadcast %cst_135 : f32 to vector<8x32xf32>
    %431 = arith.addf %430, %429 : vector<8x32xf32>
    %432 = arith.divf %430, %431 : vector<8x32xf32>
    %433 = vector.extract_strided_slice %420 {offsets = [0, 64], sizes = [8, 32], strides = [1, 1]} : vector<8x128xf32> to vector<8x32xf32>
    %434 = math.tanh %433 : vector<8x32xf32>
    %435 = vector.extract_strided_slice %420 {offsets = [0, 96], sizes = [8, 32], strides = [1, 1]} : vector<8x128xf32> to vector<8x32xf32>
    %436 = arith.negf %435 : vector<8x32xf32>
    %437 = math.exp %436 : vector<8x32xf32>
    %cst_136 = arith.constant 1.000000e+00 : f32
    %438 = vector.broadcast %cst_136 : f32 to vector<8x32xf32>
    %439 = arith.addf %438, %437 : vector<8x32xf32>
    %440 = arith.divf %438, %439 : vector<8x32xf32>
    %441 = arith.mulf %432, %405 : vector<8x32xf32>
    %442 = arith.mulf %426, %434 : vector<8x32xf32>
    %443 = arith.addf %441, %442 : vector<8x32xf32>
    %444 = math.tanh %443 : vector<8x32xf32>
    %445 = arith.mulf %440, %444 : vector<8x32xf32>
    %446 = arith.index_cast %c3_i32_130 : i32 to index
    %c0_137 = arith.constant 0 : index
    %c0_138 = arith.constant 0 : index
    %447 = vector.load %arg0[%446, %c0_137, %c0_138] : memref<8x8x32xf32, #tpu.memory_space<vmem>>, vector<1x8x32xf32>
    %448 = vector.shape_cast %447 : vector<1x8x32xf32> to vector<8x32xf32>
    %449 = arith.addf %445, %448 : vector<8x32xf32>
    %450 = arith.index_cast %c3_i32_130 : i32 to index
    %c0_139 = arith.constant 0 : index
    %c0_140 = arith.constant 0 : index
    %451 = vector.load %arg4[%450, %c0_139, %c0_140] : memref<8x8x32xf32, #tpu.memory_space<vmem>>, vector<1x8x32xf32>
    %452 = vector.shape_cast %451 : vector<1x8x32xf32> to vector<8x32xf32>
    %453 = vector.shape_cast %449 : vector<8x32xf32> to vector<1x8x32xf32>
    tpu.vector_store %arg4[%450, %c0_139, %c0_140], %453 {strides = array<i32>} : memref<8x8x32xf32, #tpu.memory_space<vmem>>, vector<1x8x32xf32>,
    %c4_i32_141 = arith.constant 4 : i32
    %cst_142 = arith.constant dense<0.000000e+00> : vector<8x128xf32>
    %454 = tpu.matmul %445, %290, %cst_142 {dimension_numbers = #tpu.dot_dimension_numbers<[1], [0], [0], [1], [0, 0, 1, 1], [], []>} : vector<8x32xf32>, vector<32x128xf32>, vector<8x128xf32> -> vector<8x128xf32>
    %455 = arith.index_cast %c4_i32_141 : i32 to index
    %c0_143 = arith.constant 0 : index
    %c0_144 = arith.constant 0 : index
    %456 = vector.load %arg6[%455, %c0_143, %c0_144] : memref<8x8x128xf32, #tpu.memory_space<vmem>>, vector<1x8x128xf32>
    %457 = vector.shape_cast %456 : vector<1x8x128xf32> to vector<8x128xf32>
    %458 = arith.addf %454, %457 : vector<8x128xf32>
    %459 = vector.extract_strided_slice %458 {offsets = [0, 0], sizes = [8, 32], strides = [1, 1]} : vector<8x128xf32> to vector<8x32xf32>
    %460 = arith.negf %459 : vector<8x32xf32>
    %461 = math.exp %460 : vector<8x32xf32>
    %cst_145 = arith.constant 1.000000e+00 : f32
    %462 = vector.broadcast %cst_145 : f32 to vector<8x32xf32>
    %463 = arith.addf %462, %461 : vector<8x32xf32>
    %464 = arith.divf %462, %463 : vector<8x32xf32>
    %465 = vector.extract_strided_slice %458 {offsets = [0, 32], sizes = [8, 32], strides = [1, 1]} : vector<8x128xf32> to vector<8x32xf32>
    %466 = arith.negf %465 : vector<8x32xf32>
    %467 = math.exp %466 : vector<8x32xf32>
    %cst_146 = arith.constant 1.000000e+00 : f32
    %468 = vector.broadcast %cst_146 : f32 to vector<8x32xf32>
    %469 = arith.addf %468, %467 : vector<8x32xf32>
    %470 = arith.divf %468, %469 : vector<8x32xf32>
    %471 = vector.extract_strided_slice %458 {offsets = [0, 64], sizes = [8, 32], strides = [1, 1]} : vector<8x128xf32> to vector<8x32xf32>
    %472 = math.tanh %471 : vector<8x32xf32>
    %473 = vector.extract_strided_slice %458 {offsets = [0, 96], sizes = [8, 32], strides = [1, 1]} : vector<8x128xf32> to vector<8x32xf32>
    %474 = arith.negf %473 : vector<8x32xf32>
    %475 = math.exp %474 : vector<8x32xf32>
    %cst_147 = arith.constant 1.000000e+00 : f32
    %476 = vector.broadcast %cst_147 : f32 to vector<8x32xf32>
    %477 = arith.addf %476, %475 : vector<8x32xf32>
    %478 = arith.divf %476, %477 : vector<8x32xf32>
    %479 = arith.mulf %470, %443 : vector<8x32xf32>
    %480 = arith.mulf %464, %472 : vector<8x32xf32>
    %481 = arith.addf %479, %480 : vector<8x32xf32>
    %482 = math.tanh %481 : vector<8x32xf32>
    %483 = arith.mulf %478, %482 : vector<8x32xf32>
    %484 = arith.index_cast %c4_i32_141 : i32 to index
    %c0_148 = arith.constant 0 : index
    %c0_149 = arith.constant 0 : index
    %485 = vector.load %arg0[%484, %c0_148, %c0_149] : memref<8x8x32xf32, #tpu.memory_space<vmem>>, vector<1x8x32xf32>
    %486 = vector.shape_cast %485 : vector<1x8x32xf32> to vector<8x32xf32>
    %487 = arith.addf %483, %486 : vector<8x32xf32>
    %488 = arith.index_cast %c4_i32_141 : i32 to index
    %c0_150 = arith.constant 0 : index
    %c0_151 = arith.constant 0 : index
    %489 = vector.load %arg4[%488, %c0_150, %c0_151] : memref<8x8x32xf32, #tpu.memory_space<vmem>>, vector<1x8x32xf32>
    %490 = vector.shape_cast %489 : vector<1x8x32xf32> to vector<8x32xf32>
    %491 = vector.shape_cast %487 : vector<8x32xf32> to vector<1x8x32xf32>
    tpu.vector_store %arg4[%488, %c0_150, %c0_151], %491 {strides = array<i32>} : memref<8x8x32xf32, #tpu.memory_space<vmem>>, vector<1x8x32xf32>,
    %c5_i32_152 = arith.constant 5 : i32
    %cst_153 = arith.constant dense<0.000000e+00> : vector<8x128xf32>
    %492 = tpu.matmul %483, %290, %cst_153 {dimension_numbers = #tpu.dot_dimension_numbers<[1], [0], [0], [1], [0, 0, 1, 1], [], []>} : vector<8x32xf32>, vector<32x128xf32>, vector<8x128xf32> -> vector<8x128xf32>
    %493 = arith.index_cast %c5_i32_152 : i32 to index
    %c0_154 = arith.constant 0 : index
    %c0_155 = arith.constant 0 : index
    %494 = vector.load %arg6[%493, %c0_154, %c0_155] : memref<8x8x128xf32, #tpu.memory_space<vmem>>, vector<1x8x128xf32>
    %495 = vector.shape_cast %494 : vector<1x8x128xf32> to vector<8x128xf32>
    %496 = arith.addf %492, %495 : vector<8x128xf32>
    %497 = vector.extract_strided_slice %496 {offsets = [0, 0], sizes = [8, 32], strides = [1, 1]} : vector<8x128xf32> to vector<8x32xf32>
    %498 = arith.negf %497 : vector<8x32xf32>
    %499 = math.exp %498 : vector<8x32xf32>
    %cst_156 = arith.constant 1.000000e+00 : f32
    %500 = vector.broadcast %cst_156 : f32 to vector<8x32xf32>
    %501 = arith.addf %500, %499 : vector<8x32xf32>
    %502 = arith.divf %500, %501 : vector<8x32xf32>
    %503 = vector.extract_strided_slice %496 {offsets = [0, 32], sizes = [8, 32], strides = [1, 1]} : vector<8x128xf32> to vector<8x32xf32>
    %504 = arith.negf %503 : vector<8x32xf32>
    %505 = math.exp %504 : vector<8x32xf32>
    %cst_157 = arith.constant 1.000000e+00 : f32
    %506 = vector.broadcast %cst_157 : f32 to vector<8x32xf32>
    %507 = arith.addf %506, %505 : vector<8x32xf32>
    %508 = arith.divf %506, %507 : vector<8x32xf32>
    %509 = vector.extract_strided_slice %496 {offsets = [0, 64], sizes = [8, 32], strides = [1, 1]} : vector<8x128xf32> to vector<8x32xf32>
    %510 = math.tanh %509 : vector<8x32xf32>
    %511 = vector.extract_strided_slice %496 {offsets = [0, 96], sizes = [8, 32], strides = [1, 1]} : vector<8x128xf32> to vector<8x32xf32>
    %512 = arith.negf %511 : vector<8x32xf32>
    %513 = math.exp %512 : vector<8x32xf32>
    %cst_158 = arith.constant 1.000000e+00 : f32
    %514 = vector.broadcast %cst_158 : f32 to vector<8x32xf32>
    %515 = arith.addf %514, %513 : vector<8x32xf32>
    %516 = arith.divf %514, %515 : vector<8x32xf32>
    %517 = arith.mulf %508, %481 : vector<8x32xf32>
    %518 = arith.mulf %502, %510 : vector<8x32xf32>
    %519 = arith.addf %517, %518 : vector<8x32xf32>
    %520 = math.tanh %519 : vector<8x32xf32>
    %521 = arith.mulf %516, %520 : vector<8x32xf32>
    %522 = arith.index_cast %c5_i32_152 : i32 to index
    %c0_159 = arith.constant 0 : index
    %c0_160 = arith.constant 0 : index
    %523 = vector.load %arg0[%522, %c0_159, %c0_160] : memref<8x8x32xf32, #tpu.memory_space<vmem>>, vector<1x8x32xf32>
    %524 = vector.shape_cast %523 : vector<1x8x32xf32> to vector<8x32xf32>
    %525 = arith.addf %521, %524 : vector<8x32xf32>
    %526 = arith.index_cast %c5_i32_152 : i32 to index
    %c0_161 = arith.constant 0 : index
    %c0_162 = arith.constant 0 : index
    %527 = vector.load %arg4[%526, %c0_161, %c0_162] : memref<8x8x32xf32, #tpu.memory_space<vmem>>, vector<1x8x32xf32>
    %528 = vector.shape_cast %527 : vector<1x8x32xf32> to vector<8x32xf32>
    %529 = vector.shape_cast %525 : vector<8x32xf32> to vector<1x8x32xf32>
    tpu.vector_store %arg4[%526, %c0_161, %c0_162], %529 {strides = array<i32>} : memref<8x8x32xf32, #tpu.memory_space<vmem>>, vector<1x8x32xf32>,
    %c6_i32_163 = arith.constant 6 : i32
    %cst_164 = arith.constant dense<0.000000e+00> : vector<8x128xf32>
    %530 = tpu.matmul %521, %290, %cst_164 {dimension_numbers = #tpu.dot_dimension_numbers<[1], [0], [0], [1], [0, 0, 1, 1], [], []>} : vector<8x32xf32>, vector<32x128xf32>, vector<8x128xf32> -> vector<8x128xf32>
    %531 = arith.index_cast %c6_i32_163 : i32 to index
    %c0_165 = arith.constant 0 : index
    %c0_166 = arith.constant 0 : index
    %532 = vector.load %arg6[%531, %c0_165, %c0_166] : memref<8x8x128xf32, #tpu.memory_space<vmem>>, vector<1x8x128xf32>
    %533 = vector.shape_cast %532 : vector<1x8x128xf32> to vector<8x128xf32>
    %534 = arith.addf %530, %533 : vector<8x128xf32>
    %535 = vector.extract_strided_slice %534 {offsets = [0, 0], sizes = [8, 32], strides = [1, 1]} : vector<8x128xf32> to vector<8x32xf32>
    %536 = arith.negf %535 : vector<8x32xf32>
    %537 = math.exp %536 : vector<8x32xf32>
    %cst_167 = arith.constant 1.000000e+00 : f32
    %538 = vector.broadcast %cst_167 : f32 to vector<8x32xf32>
    %539 = arith.addf %538, %537 : vector<8x32xf32>
    %540 = arith.divf %538, %539 : vector<8x32xf32>
    %541 = vector.extract_strided_slice %534 {offsets = [0, 32], sizes = [8, 32], strides = [1, 1]} : vector<8x128xf32> to vector<8x32xf32>
    %542 = arith.negf %541 : vector<8x32xf32>
    %543 = math.exp %542 : vector<8x32xf32>
    %cst_168 = arith.constant 1.000000e+00 : f32
    %544 = vector.broadcast %cst_168 : f32 to vector<8x32xf32>
    %545 = arith.addf %544, %543 : vector<8x32xf32>
    %546 = arith.divf %544, %545 : vector<8x32xf32>
    %547 = vector.extract_strided_slice %534 {offsets = [0, 64], sizes = [8, 32], strides = [1, 1]} : vector<8x128xf32> to vector<8x32xf32>
    %548 = math.tanh %547 : vector<8x32xf32>
    %549 = vector.extract_strided_slice %534 {offsets = [0, 96], sizes = [8, 32], strides = [1, 1]} : vector<8x128xf32> to vector<8x32xf32>
    %550 = arith.negf %549 : vector<8x32xf32>
    %551 = math.exp %550 : vector<8x32xf32>
    %cst_169 = arith.constant 1.000000e+00 : f32
    %552 = vector.broadcast %cst_169 : f32 to vector<8x32xf32>
    %553 = arith.addf %552, %551 : vector<8x32xf32>
    %554 = arith.divf %552, %553 : vector<8x32xf32>
    %555 = arith.mulf %546, %519 : vector<8x32xf32>
    %556 = arith.mulf %540, %548 : vector<8x32xf32>
    %557 = arith.addf %555, %556 : vector<8x32xf32>
    %558 = math.tanh %557 : vector<8x32xf32>
    %559 = arith.mulf %554, %558 : vector<8x32xf32>
    %560 = arith.index_cast %c6_i32_163 : i32 to index
    %c0_170 = arith.constant 0 : index
    %c0_171 = arith.constant 0 : index
    %561 = vector.load %arg0[%560, %c0_170, %c0_171] : memref<8x8x32xf32, #tpu.memory_space<vmem>>, vector<1x8x32xf32>
    %562 = vector.shape_cast %561 : vector<1x8x32xf32> to vector<8x32xf32>
    %563 = arith.addf %559, %562 : vector<8x32xf32>
    %564 = arith.index_cast %c6_i32_163 : i32 to index
    %c0_172 = arith.constant 0 : index
    %c0_173 = arith.constant 0 : index
    %565 = vector.load %arg4[%564, %c0_172, %c0_173] : memref<8x8x32xf32, #tpu.memory_space<vmem>>, vector<1x8x32xf32>
    %566 = vector.shape_cast %565 : vector<1x8x32xf32> to vector<8x32xf32>
    %567 = vector.shape_cast %563 : vector<8x32xf32> to vector<1x8x32xf32>
    tpu.vector_store %arg4[%564, %c0_172, %c0_173], %567 {strides = array<i32>} : memref<8x8x32xf32, #tpu.memory_space<vmem>>, vector<1x8x32xf32>,
    %c7_i32_174 = arith.constant 7 : i32
    %cst_175 = arith.constant dense<0.000000e+00> : vector<8x128xf32>
    %568 = tpu.matmul %559, %290, %cst_175 {dimension_numbers = #tpu.dot_dimension_numbers<[1], [0], [0], [1], [0, 0, 1, 1], [], []>} : vector<8x32xf32>, vector<32x128xf32>, vector<8x128xf32> -> vector<8x128xf32>
    %569 = arith.index_cast %c7_i32_174 : i32 to index
    %c0_176 = arith.constant 0 : index
    %c0_177 = arith.constant 0 : index
    %570 = vector.load %arg6[%569, %c0_176, %c0_177] : memref<8x8x128xf32, #tpu.memory_space<vmem>>, vector<1x8x128xf32>
    %571 = vector.shape_cast %570 : vector<1x8x128xf32> to vector<8x128xf32>
    %572 = arith.addf %568, %571 : vector<8x128xf32>
    %573 = vector.extract_strided_slice %572 {offsets = [0, 0], sizes = [8, 32], strides = [1, 1]} : vector<8x128xf32> to vector<8x32xf32>
    %574 = arith.negf %573 : vector<8x32xf32>
    %575 = math.exp %574 : vector<8x32xf32>
    %cst_178 = arith.constant 1.000000e+00 : f32
    %576 = vector.broadcast %cst_178 : f32 to vector<8x32xf32>
    %577 = arith.addf %576, %575 : vector<8x32xf32>
    %578 = arith.divf %576, %577 : vector<8x32xf32>
    %579 = vector.extract_strided_slice %572 {offsets = [0, 32], sizes = [8, 32], strides = [1, 1]} : vector<8x128xf32> to vector<8x32xf32>
    %580 = arith.negf %579 : vector<8x32xf32>
    %581 = math.exp %580 : vector<8x32xf32>
    %cst_179 = arith.constant 1.000000e+00 : f32
    %582 = vector.broadcast %cst_179 : f32 to vector<8x32xf32>
    %583 = arith.addf %582, %581 : vector<8x32xf32>
    %584 = arith.divf %582, %583 : vector<8x32xf32>
    %585 = vector.extract_strided_slice %572 {offsets = [0, 64], sizes = [8, 32], strides = [1, 1]} : vector<8x128xf32> to vector<8x32xf32>
    %586 = math.tanh %585 : vector<8x32xf32>
    %587 = vector.extract_strided_slice %572 {offsets = [0, 96], sizes = [8, 32], strides = [1, 1]} : vector<8x128xf32> to vector<8x32xf32>
    %588 = arith.negf %587 : vector<8x32xf32>
    %589 = math.exp %588 : vector<8x32xf32>
    %cst_180 = arith.constant 1.000000e+00 : f32
    %590 = vector.broadcast %cst_180 : f32 to vector<8x32xf32>
    %591 = arith.addf %590, %589 : vector<8x32xf32>
    %592 = arith.divf %590, %591 : vector<8x32xf32>
    %593 = arith.mulf %584, %557 : vector<8x32xf32>
    %594 = arith.mulf %578, %586 : vector<8x32xf32>
    %595 = arith.addf %593, %594 : vector<8x32xf32>
    %596 = math.tanh %595 : vector<8x32xf32>
    %597 = arith.mulf %592, %596 : vector<8x32xf32>
    %598 = arith.index_cast %c7_i32_174 : i32 to index
    %c0_181 = arith.constant 0 : index
    %c0_182 = arith.constant 0 : index
    %599 = vector.load %arg0[%598, %c0_181, %c0_182] : memref<8x8x32xf32, #tpu.memory_space<vmem>>, vector<1x8x32xf32>
    %600 = vector.shape_cast %599 : vector<1x8x32xf32> to vector<8x32xf32>
    %601 = arith.addf %597, %600 : vector<8x32xf32>
    %602 = arith.index_cast %c7_i32_174 : i32 to index
    %c0_183 = arith.constant 0 : index
    %c0_184 = arith.constant 0 : index
    %603 = vector.load %arg4[%602, %c0_183, %c0_184] : memref<8x8x32xf32, #tpu.memory_space<vmem>>, vector<1x8x32xf32>
    %604 = vector.shape_cast %603 : vector<1x8x32xf32> to vector<8x32xf32>
    %605 = vector.shape_cast %601 : vector<8x32xf32> to vector<1x8x32xf32>
    tpu.vector_store %arg4[%602, %c0_183, %c0_184], %605 {strides = array<i32>} : memref<8x8x32xf32, #tpu.memory_space<vmem>>, vector<1x8x32xf32>,
    %c8_i32_185 = arith.constant 8 : i32
    return
  }
}

</mosaic_0001>

<bundles_post_ra>
// kernel: tpu_custom_call.1
= control target key start
LH: loop header
LB: loop body
LE: loop exit
PB: predicated region body
PF: predicated region fallthrough
CT: control target
= control target key end

     0   :  { %9 = vsyncpa [#allocation5], 0  ;;  %s3170_s0 = inlined_call_operand.hbm [shape: f32[8,8,32], index: 0, kind: input, shape index: {}]   ;;  %s3171_s1 = inlined_call_operand.hbm [shape: f32[2,32,128], index: 1, kind: input, shape index: {}]   ;;  %s3172_s2 = inlined_call_operand.hbm [shape: f32[2,32,128], index: 2, kind: input, shape index: {}]   ;;  %s3173_s3 = inlined_call_operand.vmem [shape: f32[2,1,128], index: 3, kind: input, shape index: {}]   ;;  %s3174_s4 = inlined_call_operand.hbm [shape: f32[8,8,32], index: 4, kind: output, shape index: {}]  }
   0x1   :  { %10 = vsyncpa [#allocation8], 0 }
   0x2   :  { %11 = vsyncpa [#allocation6], 0  ;;  %s2726_s15 = smov [#allocation7]   ;;  %s2727_s17 = smov [#allocation4]  }
   0x3   :  { %s29_s16 = sshll.u32 %s2726_s15, 4  ;;  %s17_s18 = sshll.u32 %s2727_s17, 4  ;;  %s30_s16 = int_to_ptr.vmem [resolvable:$true] %s29_s16  ;;  %s18_s18 = int_to_ptr.vmem [resolvable:$true] %s17_s18 }
   0x4   :  { %s2648_s19 = scalar_lea.vmem %s30_s16, 1024  ;;  %p2653_p1 = scmp.lt.s32.totalorder %s30_s16, %s30_s16 }
   0x5   :  { %p2649_p0 = scmp.ne.s32.totalorder %s30_s16, %s2648_s19  ;;  %p2654_p2 = scmp.lt.s32.totalorder %s2648_s19, %s2648_s19 }
   0x7   :  { %p2655_p3 = por %p2654_p2, %p2653_p1 }
   0x9   :  { %p2656_p4 = pnand %p2655_p3, %p2649_p0 }
   0xb   :  { %2659 = shalt.err (!%p2656_p4)
}
   0xc   :  { %s2728_s20 = smov 128   ;;  %s2729_s21 = smov 8  }
   0xd   :  { %35 = dma.hbm_to_vmem [thread:$0]  %s3171_s1, 1024, %s30_s16, [#allocation8], %s2728_s20, %s2728_s20, %s2729_s21  }
   0xe   :  { %s2668_s24 = scalar_lea.vmem %s18_s18, 1024  ;;  %p2673_p6 = scmp.lt.s32.totalorder %s18_s18, %s18_s18 }
   0xf   :  { %p2669_p5 = scmp.ne.s32.totalorder %s18_s18, %s2668_s24  ;;  %p2674_p7 = scmp.lt.s32.totalorder %s2668_s24, %s2668_s24 }
  0x11   :  { %p2675_p8 = por %p2674_p7, %p2673_p6 }
  0x13   :  { %p2676_p9 = pnand %p2675_p8, %p2669_p5 }
  0x15   :  { %2679 = shalt.err (!%p2676_p9)
}
  0x16   :  { %23 = dma.hbm_to_vmem [thread:$0]  %s3170_s0, 1024, %s18_s18, [#allocation5], %s2728_s20, %s2728_s20, %s2729_s21  }
  0x17   :  { %s2730_s27 = smov [#allocation9]  }
  0x18   :  { %s41_s28 = sshll.u32 %s2730_s27, 4  ;;  %s42_s28 = int_to_ptr.vmem [resolvable:$true] %s41_s28 }
  0x19   :  { %s2688_s29 = scalar_lea.vmem %s42_s28, 1024  ;;  %p2693_p11 = scmp.lt.s32.totalorder %s42_s28, %s42_s28 }
  0x1a   :  { %p2689_p10 = scmp.ne.s32.totalorder %s42_s28, %s2688_s29  ;;  %p2694_p12 = scmp.lt.s32.totalorder %s2688_s29, %s2688_s29 }
  0x1c   :  { %p2695_p13 = por %p2694_p12, %p2693_p11 }
  0x1e   :  { %p2696_p0 = pnand %p2695_p13, %p2689_p10 }
  0x20   :  { %2699 = shalt.err (!%p2696_p0)
}
  0x21   :  { %47 = dma.hbm_to_vmem [thread:$0]  %s3172_s2, 1024, %s42_s28, [#allocation8], %s2728_s20, %s2728_s20, %s2729_s21  }
  0x22   :  { %2720 = dma.done.wait [#allocation5], 1024  }
  0x23   :  { %2721 = vsyncadd [#allocation5], 4294966272 }
  0x24   :  { %2722 = dma.done.wait [#allocation8], 2048  }
  0x25   :  { %2723 = vsyncadd [#allocation8], 4294965248  ;;  %v2731_v0 = vmov 0.0   ;;  %vm2732_vm0 = vmmov 0   ;;  %v62_v1 = vld [vmem:[#allocation7 + $0x18] sm:$0xff]  ;;  %v61_v2 = vld [vmem:[#allocation7 + $0x10] sm:$0xff] }
  0x26   :  { %2302 = vmatprep.subr.mxu1 %v2731_v0  ;;  %2310 = vmatprep.mubr.msk.f32.mxu1 %vm2732_vm0, %v2731_v0  ;;  %v2783_v3 = vld [vmem:[#allocation9 + $0x18] sm:$0xff]  ;;  %v2786_v4 = vld [vmem:[#allocation9 + $0x10] sm:$0xff]  ;;  %v60_v5 = vld [vmem:[#allocation7 + $0x8] sm:$0xff]  ;;  %vm82_vm1 = vcmask 261120   ;;  %s2733_s5 = smov 64   ;;  %s2734_s6 = smov 32  }
  0x27   :  { %2282 = vmatprep.subr.mxu0 %v62_v1  ;;  %2303 = vmatpush3.msra.mxu1 %v2783_v3  ;;  %v68_v6 = vld [vmem:[#allocation4] sm:$0xff]  ;;  %v2790_v7 = vld [vmem:[#allocation9 + $0x8] sm:$0xff]  ;;  %v70_v46 = vld [vmem:[#allocation4 + $0x10] sm:$0xff]  ;;  %s2736_s9 = smov [#allocation10]  }
  0x28   :  { %2283 = vmatpush3.msra.mxu0 %v62_v1  ;;  %2304 = vmatprep.subr.mxu1 %v2731_v0  ;;  %v59_v8 = vld [vmem:[#allocation7] sm:$0xff]  ;;  %v69_v10 = vld [vmem:[#allocation4 + $0x8] sm:$0xff]  ;;  %v71_v47 = vld [vmem:[#allocation4 + $0x18] sm:$0xff]  ;;  %s2116_s10 = sshll.u32 %s2736_s9, 4  ;;  %s2117_s10 = int_to_ptr.vmem [resolvable:$true] %s2116_s10 }
  0x29   :  { %2284 = vmatprep.subr.mxu0 %v61_v2  ;;  %2305 = vmatpush3.msra.mxu1 %v2786_v4  ;;  %v2794_v9 = vld [vmem:[#allocation9] sm:$0xff]  ;;  %v73_v49 = vld [vmem:[#allocation4 + $0x28] sm:$0xff]  ;;  %v74_v50 = vld [vmem:[#allocation4 + $0x30] sm:$0xff]  ;;  %s2700_s11 = scalar_lea.vmem %s2117_s10, 1024  ;;  %p2705_p2 = scmp.lt.s32.totalorder %s2117_s10, %s2117_s10 }
  0x2a   :  { %2285 = vmatpush3.msra.mxu0 %v61_v2  ;;  %2306 = vmatprep.subr.mxu1 %v2731_v0  ;;  %v2824_v13 = vld [vmem:[%s3173_s3] ss:$0 sm:$0xff]  ;;  %v75_v51 = vld [vmem:[#allocation4 + $0x38] sm:$0xff]  ;;  %p2701_p1 = scmp.ne.s32.totalorder %s2117_s10, %s2700_s11  ;;  %p2706_p3 = scmp.lt.s32.totalorder %s2700_s11, %s2700_s11 }
  0x2b   :  { %2286 = vmatprep.subr.mxu0 %v60_v5  ;;  %2290 = vmatprep.mubr.msk.f32.mxu0 %vm82_vm1, %v68_v6  ;;  %v72_v48 = vld [vmem:[#allocation4 + $0x20] sm:$0xff] }
  0x2c   :  { %2287 = vmatpush3.msra.mxu0 %v60_v5  ;;  %2307 = vmatpush3.msra.mxu1 %v2790_v7  ;;  %p2707_p4 = por %p2706_p3, %p2705_p2 }
  0x2d   :  { %2288 = vmatprep.subr.mxu0 %v59_v8  ;;  %2308 = vmatprep.subr.mxu1 %v2731_v0 }
  0x2e   :  { %2289 = vmatpush3.msra.mxu0 %v59_v8  ;;  %2309 = vmatpush3.msra.mxu1 %v2794_v9  ;;  %p2708_p5 = pnand %p2707_p4, %p2701_p1 }
  0x2f   :  { %2291 = vmatmul.mubr.msk.f32.vlgmr.msra.gmra.mxu0 %vm82_vm1, %v69_v10  ;;  %2311 = vmatmul.mubr.f32.vlgmr.msra.gmra.mxu1 %v2731_v0 }
  0x30   :  { %2313 = vmatprep.subr.mxu1 %v2731_v0  ;;  %2321 = vmatprep.mubr.msk.f32.mxu1 %vm2732_vm0, %v2731_v0 }
  0x31   :  { %2314 = vmatpush3.msra.mxu1 %v2783_v3  ;;  %2324 = vmatprep.subr.mxu0 %v2731_v0 }
  0x32   :  { %2315 = vmatprep.subr.mxu1 %v2731_v0  ;;  %2325 = vmatpush3.msra.mxu0 %v2783_v3 }
  0x33   :  { %2316 = vmatpush3.msra.mxu1 %v2786_v4  ;;  %2326 = vmatprep.subr.mxu0 %v2731_v0 }
  0x34   :  { %2317 = vmatprep.subr.mxu1 %v2731_v0  ;;  %2327 = vmatpush3.msra.mxu0 %v2786_v4 }
  0x35   :  { %2318 = vmatpush3.msra.mxu1 %v2790_v7  ;;  %2328 = vmatprep.subr.mxu0 %v2731_v0 }
  0x36   :  { %2319 = vmatprep.subr.mxu1 %v2731_v0  ;;  %2329 = vmatpush3.msra.mxu0 %v2790_v7 }
  0x37   :  { %2320 = vmatpush3.msra.mxu1 %v2794_v9  ;;  %2330 = vmatprep.subr.mxu0 %v2731_v0 }
  0x38   :  { %2331 = vmatpush3.msra.mxu0 %v2794_v9  ;;  %2335 = vmatprep.subr.mxu1 %v2731_v0 }
  0x39   :  { %2346 = vmatprep.subr.mxu0 %v2731_v0  ;;  %2293 = vmatprep.mubr.msk.f32.mxu0 %vm82_vm1, %v70_v46 }
  0x3a   :  { %2294 = vmatmul.mubr.msk.f32.gmra.mxu0 %vm82_vm1, %v71_v47 }
  0x3b   :  { %2296 = vmatprep.mubr.msk.f32.mxu0 %vm82_vm1, %v72_v48 }
  0x3e   :  { %2297 = vmatmul.mubr.msk.f32.gmra.mxu0 %vm82_vm1, %v73_v49 }
  0x3f   :  { %2299 = vmatprep.mubr.msk.f32.mxu0 %vm82_vm1, %v74_v50 }
  0x42   :  { %2300 = vmatmul.mubr.msk.f32.gmra.mxu0 %vm82_vm1, %v75_v51 }
  0x43   :  { %2332 = vmatprep.mubr.msk.f32.mxu0 %vm2732_vm0, %v2731_v0 }
  0xef   :  { %v2292_v11 = vpop.f32.mrf.mxu0  ;;  %v290_v12 = vpop.f32.mrf.mxu1 }
  0xf0   :  { %v179_v32 = vadd.f32 %v2292_v11, %v2824_v13 }
  0xf1   :  { %v173_v14 = vpop.f32.mrf.mxu0  ;;  %v2312_v15 = vpop.f32.mrf.mxu1 }
  0xf2   :  { %v174_v16 = vadd.f32 %v2824_v13, %v173_v14 }
  0xf4   :  { %v291_v17 = vadd.f32 %v290_v12, %v174_v16 }
  0xf6   :  { %2509 = vtanh.f32 %v291_v17  ;;  %v2138_v19 = vmul.f32 -1.442695, %v291_v17 }
  0xf8   :  { %2511 = vpow2.f32 %v2138_v19 }
  0xfa   :  { %v2295_v56 = vpop.f32.mrf.mxu0 }
  0xfc   :  { %v183_v57 = vpop.f32.mrf.mxu0 }
  0xfd   :  { %v184_v62 = vadd.f32 %v2824_v13, %v183_v57 }
  0xfe   :  { %v2868_v58 = vpop.f32.mrf.mxu0 }
 0x100   :  { %v2870_v59 = vpop.f32.mrf.mxu0 }
 0x102   :  { %v2872_v60 = vpop.f32.mrf.mxu0 }
 0x103   :  { %v2510_v18 = vpop.eup %2509 }
 0x104   :  { %303 = vrot.lane.b32.xlu0 %v2510_v18, %s2733_s5  ;;  %v2874_v61 = vpop.f32.mrf.mxu0 }
 0x105   :  { %v2512_v20 = vpop.eup %2511 }
 0x106   :  { %v297_v21 = vadd.f32 1.0, %v2512_v20 }
 0x108   :  { %2513 = vrcp.f32 %v297_v21 }
 0x115   :  { %v2514_v22 = vpop.eup %2513 }
 0x116   :  { %v301_v25 = vmul.f32 0.0, %v2514_v22 }
 0x176   :  { %v304_v23 = vpop.permute.xlu0 %303 }
 0x177   :  { %v306_v24 = vmul.f32 %v2514_v22, %v304_v23 }
 0x179   :  { %308 = vrot.lane.b32.xlu0 %v306_v24, %s2734_s6 }
 0x1eb   :  { %v309_v26 = vpop.permute.xlu0 %308 }
 0x1ec   :  { %v311_v27 = vadd.f32 %v309_v26, %v301_v25 }
 0x1ee   :  { %2515 = vtanh.f32 %v311_v27 }
 0x1fb   :  { %v2516_v28 = vpop.eup %2515 }
 0x1fc   :  { %314 = vrot.lane.b32.xlu1 %v2516_v28, %s2733_s5 }
 0x26e   :  { %v315_v29 = vpop.permute.xlu1 %314 }
 0x26f   :  { %v317_v30 = vmul.f32 %v2514_v22, %v315_v29  ;;  %v189_v22 = vadd.f32 %v2295_v56, %v2824_v13 }
 0x271   :  { %319 = vrot.lane.b32.xlu1 %v317_v30, %s2734_s6 }
 0x2e3   :  { %v320_v31 = vpop.permute.xlu1 %319 }
 0x2e4   :  { %322 = vst.msk [vmem:[#allocation2] sm:$0xff] %vm82_vm1, %v320_v31  ;;  %2322 = vmatmul.mubr.msk.f32.vlgmr.msra.gmra.mxu1 %vm82_vm1, %v320_v31 }
 0x2e5   :  { %2336 = vmatpush3.msra.mxu1 %v2783_v3  ;;  %2343 = vmatprep.mubr.msk.f32.mxu1 %vm2732_vm0, %v2731_v0 }
 0x2e6   :  { %2337 = vmatprep.subr.mxu1 %v2731_v0 }
 0x2e7   :  { %2338 = vmatpush3.msra.mxu1 %v2786_v4 }
 0x2e8   :  { %2339 = vmatprep.subr.mxu1 %v2731_v0 }
 0x2e9   :  { %2340 = vmatpush3.msra.mxu1 %v2790_v7 }
 0x2ea   :  { %2341 = vmatprep.subr.mxu1 %v2731_v0 }
 0x2eb   :  { %2342 = vmatpush3.msra.mxu1 %v2794_v9 }
 0x2ec   :  { %2357 = vmatprep.subr.mxu1 %v2731_v0 }
 0x3a4   :  { %v393_v33 = vpop.f32.mrf.mxu1 }
 0x3a5   :  { %v394_v34 = vadd.f32 %v393_v33, %v179_v32 }
 0x3a6   :  { %v2323_v35 = vpop.f32.mrf.mxu1 }
 0x3a7   :  { %2517 = vtanh.f32 %v394_v34  ;;  %v2140_v37 = vmul.f32 -1.442695, %v394_v34 }
 0x3a9   :  { %2519 = vpow2.f32 %v2140_v37 }
 0x3b4   :  { %v2518_v36 = vpop.eup %2517 }
 0x3b5   :  { %406 = vrot.lane.b32.xlu0 %v2518_v36, %s2733_s5 }
 0x3b6   :  { %v2520_v38 = vpop.eup %2519 }
 0x3b7   :  { %v400_v39 = vadd.f32 1.0, %v2520_v38 }
 0x3b9   :  { %2521 = vrcp.f32 %v400_v39 }
 0x3c6   :  { %v2522_v40 = vpop.eup %2521 }
 0x3c7   :  { %v404_v43 = vmul.f32 %v2522_v40, %v311_v27 }
 0x427   :  { %v407_v41 = vpop.permute.xlu0 %406 }
 0x428   :  { %v409_v42 = vmul.f32 %v2522_v40, %v407_v41 }
 0x42a   :  { %411 = vrot.lane.b32.xlu1 %v409_v42, %s2734_s6 }
 0x49c   :  { %v412_v44 = vpop.permute.xlu1 %411 }
 0x49d   :  { %v414_v45 = vadd.f32 %v412_v44, %v404_v43 }
 0x49f   :  { %2523 = vtanh.f32 %v414_v45 }
 0x4ac   :  { %v2524_v52 = vpop.eup %2523 }
 0x4ad   :  { %417 = vrot.lane.b32.xlu0 %v2524_v52, %s2733_s5 }
 0x51f   :  { %v418_v53 = vpop.permute.xlu0 %417 }
 0x520   :  { %v420_v54 = vmul.f32 %v2522_v40, %v418_v53  ;;  %v194_v40 = vadd.f32 %v2824_v13, %v2870_v59 }
 0x522   :  { %422 = vrot.lane.b32.xlu1 %v420_v54, %s2734_s6 }
 0x594   :  { %v423_v55 = vpop.permute.xlu1 %422 }
 0x595   :  { %426 = vst.msk [vmem:[#allocation2 + $0x8] sm:$0xff] %vm82_vm1, %v423_v55  ;;  %2333 = vmatmul.mubr.msk.f32.vlgmr.msra.gmra.mxu0 %vm82_vm1, %v423_v55 }
 0x596   :  { %2347 = vmatpush3.msra.mxu0 %v2783_v3  ;;  %2354 = vmatprep.mubr.msk.f32.mxu0 %vm2732_vm0, %v2731_v0 }
 0x597   :  { %2348 = vmatprep.subr.mxu0 %v2731_v0 }
 0x598   :  { %2349 = vmatpush3.msra.mxu0 %v2786_v4 }
 0x599   :  { %2350 = vmatprep.subr.mxu0 %v2731_v0 }
 0x59a   :  { %2351 = vmatpush3.msra.mxu0 %v2790_v7 }
 0x59b   :  { %2352 = vmatprep.subr.mxu0 %v2731_v0 }
 0x59c   :  { %2353 = vmatpush3.msra.mxu0 %v2794_v9 }
 0x59d   :  { %2368 = vmatprep.subr.mxu0 %v2731_v0 }
 0x655   :  { %v497_v63 = vpop.f32.mrf.mxu0 }
 0x656   :  { %v498_v1 = vadd.f32 %v497_v63, %v184_v62 }
 0x657   :  { %v2334_v2 = vpop.f32.mrf.mxu0 }
 0x658   :  { %2525 = vtanh.f32 %v498_v1  ;;  %v2142_v6 = vmul.f32 -1.442695, %v498_v1 }
 0x65a   :  { %2527 = vpow2.f32 %v2142_v6 }
 0x665   :  { %v2526_v5 = vpop.eup %2525 }
 0x666   :  { %510 = vrot.lane.b32.xlu0 %v2526_v5, %s2733_s5 }
 0x667   :  { %v2528_v8 = vpop.eup %2527 }
 0x668   :  { %v504_v10 = vadd.f32 1.0, %v2528_v8 }
 0x66a   :  { %2529 = vrcp.f32 %v504_v10 }
 0x677   :  { %v2530_v11 = vpop.eup %2529 }
 0x678   :  { %v508_v15 = vmul.f32 %v2530_v11, %v414_v45 }
 0x6d8   :  { %v511_v12 = vpop.permute.xlu0 %510 }
 0x6d9   :  { %v513_v14 = vmul.f32 %v2530_v11, %v511_v12 }
 0x6db   :  { %515 = vrot.lane.b32.xlu1 %v513_v14, %s2734_s6 }
 0x74d   :  { %v516_v16 = vpop.permute.xlu1 %515 }
 0x74e   :  { %v518_v17 = vadd.f32 %v516_v16, %v508_v15 }
 0x750   :  { %2531 = vtanh.f32 %v518_v17 }
 0x75d   :  { %v2532_v18 = vpop.eup %2531 }
 0x75e   :  { %521 = vrot.lane.b32.xlu0 %v2532_v18, %s2733_s5  ;;  %v1063_v18 = vld [vmem:[#allocation2] sm:$0xff] }
 0x7d0   :  { %v522_v19 = vpop.permute.xlu0 %521 }
 0x7d1   :  { %v524_v20 = vmul.f32 %v2530_v11, %v522_v19  ;;  %v1055_v11 = vld [vmem:[#allocation7 + $0x38] sm:$0xff]  ;;  %v1053_v19 = vld [vmem:[#allocation7 + $0x28] sm:$0xff] }
 0x7d3   :  { %526 = vrot.lane.b32.xlu1 %v524_v20, %s2734_s6  ;;  %v1052_v20 = vld [vmem:[#allocation7 + $0x20] sm:$0xff] }
 0x845   :  { %v527_v21 = vpop.permute.xlu1 %526 }
 0x846   :  { %530 = vst.msk [vmem:[#allocation2 + $0x10] sm:$0xff] %vm82_vm1, %v527_v21  ;;  %2344 = vmatmul.mubr.msk.f32.vlgmr.msra.gmra.mxu1 %vm82_vm1, %v527_v21  ;;  %v1064_v21 = vld [vmem:[#allocation2 + $0x8] sm:$0xff] }
 0x847   :  { %2358 = vmatpush3.msra.mxu1 %v2783_v3  ;;  %2365 = vmatprep.mubr.msk.f32.mxu1 %vm2732_vm0, %v2731_v0 }
 0x848   :  { %2359 = vmatprep.subr.mxu1 %v2731_v0 }
 0x849   :  { %2360 = vmatpush3.msra.mxu1 %v2786_v4 }
 0x84a   :  { %2361 = vmatprep.subr.mxu1 %v2731_v0 }
 0x84b   :  { %2362 = vmatpush3.msra.mxu1 %v2790_v7 }
 0x84c   :  { %2363 = vmatprep.subr.mxu1 %v2731_v0 }
 0x84d   :  { %2364 = vmatpush3.msra.mxu1 %v2794_v9 }
 0x84e   :  { %2379 = vmatprep.subr.mxu1 %v2731_v0 }
 0x906   :  { %v601_v23 = vpop.f32.mrf.mxu1 }
 0x907   :  { %v602_v24 = vadd.f32 %v601_v23, %v189_v22  ;;  %v1065_v22 = vld [vmem:[#allocation2 + $0x10] sm:$0xff] }
 0x908   :  { %v2345_v25 = vpop.f32.mrf.mxu1 }
 0x909   :  { %2533 = vtanh.f32 %v602_v24  ;;  %v2144_v27 = vmul.f32 -1.442695, %v602_v24 }
 0x90b   :  { %2535 = vpow2.f32 %v2144_v27 }
 0x916   :  { %v2534_v26 = vpop.eup %2533 }
 0x917   :  { %614 = vrot.lane.b32.xlu0 %v2534_v26, %s2733_s5  ;;  %v204_v26 = vadd.f32 %v2824_v13, %v2874_v61 }
 0x918   :  { %v2536_v28 = vpop.eup %2535 }
 0x919   :  { %v608_v29 = vadd.f32 1.0, %v2536_v28 }
 0x91b   :  { %2537 = vrcp.f32 %v608_v29 }
 0x928   :  { %v2538_v30 = vpop.eup %2537 }
 0x929   :  { %v612_v33 = vmul.f32 %v2538_v30, %v518_v17  ;;  %v1054_v17 = vld [vmem:[#allocation7 + $0x30] sm:$0xff] }
 0x989   :  { %v615_v31 = vpop.permute.xlu0 %614 }
 0x98a   :  { %v617_v32 = vmul.f32 %v2538_v30, %v615_v31 }
 0x98c   :  { %619 = vrot.lane.b32.xlu1 %v617_v32, %s2734_s6 }
 0x9fe   :  { %v620_v34 = vpop.permute.xlu1 %619 }
 0x9ff   :  { %v622_v35 = vadd.f32 %v620_v34, %v612_v33 }
 0xa01   :  { %2539 = vtanh.f32 %v622_v35 }
 0xa0e   :  { %v2540_v36 = vpop.eup %2539 }
 0xa0f   :  { %625 = vrot.lane.b32.xlu0 %v2540_v36, %s2733_s5 }
 0xa81   :  { %v626_v37 = vpop.permute.xlu0 %625 }
 0xa82   :  { %v628_v38 = vmul.f32 %v2538_v30, %v626_v37 }
 0xa84   :  { %630 = vrot.lane.b32.xlu1 %v628_v38, %s2734_s6 }
 0xaf6   :  { %v631_v39 = vpop.permute.xlu1 %630 }
 0xaf7   :  { %634 = vst.msk [vmem:[#allocation2 + $0x18] sm:$0xff] %vm82_vm1, %v631_v39  ;;  %2355 = vmatmul.mubr.msk.f32.vlgmr.msra.gmra.mxu0 %vm82_vm1, %v631_v39 }
 0xaf8   :  { %2369 = vmatpush3.msra.mxu0 %v2783_v3  ;;  %2376 = vmatprep.mubr.msk.f32.mxu0 %vm2732_vm0, %v2731_v0 }
 0xaf9   :  { %2370 = vmatprep.subr.mxu0 %v2731_v0 }
 0xafa   :  { %2371 = vmatpush3.msra.mxu0 %v2786_v4 }
 0xafb   :  { %2372 = vmatprep.subr.mxu0 %v2731_v0 }
 0xafc   :  { %2373 = vmatpush3.msra.mxu0 %v2790_v7 }
 0xafd   :  { %2374 = vmatprep.subr.mxu0 %v2731_v0 }
 0xafe   :  { %2375 = vmatpush3.msra.mxu0 %v2794_v9  ;;  %v1066_v23 = vld [vmem:[#allocation2 + $0x18] sm:$0xff] }
 0xaff   :  { %2390 = vmatprep.subr.mxu0 %v1055_v11 }
 0xbb7   :  { %v705_v41 = vpop.f32.mrf.mxu0 }
 0xbb8   :  { %v706_v42 = vadd.f32 %v705_v41, %v194_v40  ;;  %v2950_v40 = vld [vmem:[#allocation9 + $0x38] sm:$0xff]  ;;  %v2953_v41 = vld [vmem:[#allocation9 + $0x30] sm:$0xff] }
 0xbb9   :  { %v2356_v43 = vpop.f32.mrf.mxu0 }
 0xbba   :  { %2541 = vtanh.f32 %v706_v42  ;;  %v2146_v45 = vmul.f32 -1.442695, %v706_v42  ;;  %v2957_v42 = vld [vmem:[#allocation9 + $0x28] sm:$0xff]  ;;  %v2961_v43 = vld [vmem:[#allocation9 + $0x20] sm:$0xff] }
 0xbbc   :  { %2543 = vpow2.f32 %v2146_v45 }
 0xbc7   :  { %v2542_v44 = vpop.eup %2541 }
 0xbc8   :  { %718 = vrot.lane.b32.xlu0 %v2542_v44, %s2733_s5 }
 0xbc9   :  { %v2544_v46 = vpop.eup %2543 }
 0xbca   :  { %v712_v47 = vadd.f32 1.0, %v2544_v46 }
 0xbcc   :  { %2545 = vrcp.f32 %v712_v47 }
 0xbd9   :  { %v2546_v48 = vpop.eup %2545 }
 0xbda   :  { %v716_v51 = vmul.f32 %v2546_v48, %v622_v35 }
 0xc3a   :  { %v719_v49 = vpop.permute.xlu0 %718 }
 0xc3b   :  { %v721_v50 = vmul.f32 %v2546_v48, %v719_v49 }
 0xc3d   :  { %723 = vrot.lane.b32.xlu1 %v721_v50, %s2734_s6 }
 0xcaf   :  { %v724_v52 = vpop.permute.xlu1 %723 }
 0xcb0   :  { %v726_v53 = vadd.f32 %v724_v52, %v716_v51 }
 0xcb2   :  { %2547 = vtanh.f32 %v726_v53 }
 0xcbf   :  { %v2548_v54 = vpop.eup %2547 }
 0xcc0   :  { %729 = vrot.lane.b32.xlu0 %v2548_v54, %s2733_s5  ;;  %v2998_v54 = vld [vmem:[%s3173_s3 + $0x1] ss:$0 sm:$0xff]  ;;  %s2735_s3 = smov 96  }
 0xd32   :  { %v730_v55 = vpop.permute.xlu0 %729 }
 0xd33   :  { %v732_v56 = vmul.f32 %v2546_v48, %v730_v55  ;;  %v209_v48 = vadd.f32 %v2872_v60, %v2824_v13 }
 0xd35   :  { %734 = vrot.lane.b32.xlu1 %v732_v56, %s2734_s6 }
 0xda7   :  { %v735_v57 = vpop.permute.xlu1 %734 }
 0xda8   :  { %738 = vst.msk [vmem:[#allocation2 + $0x20] sm:$0xff] %vm82_vm1, %v735_v57  ;;  %2366 = vmatmul.mubr.msk.f32.vlgmr.msra.gmra.mxu1 %vm82_vm1, %v735_v57 }
 0xda9   :  { %2380 = vmatpush3.msra.mxu1 %v2783_v3  ;;  %2387 = vmatprep.mubr.msk.f32.mxu1 %vm2732_vm0, %v2731_v0  ;;  %v199_v3 = vadd.f32 %v2868_v58, %v2824_v13 }
 0xdaa   :  { %2381 = vmatprep.subr.mxu1 %v2731_v0 }
 0xdab   :  { %2382 = vmatpush3.msra.mxu1 %v2786_v4 }
 0xdac   :  { %2383 = vmatprep.subr.mxu1 %v2731_v0 }
 0xdad   :  { %2384 = vmatpush3.msra.mxu1 %v2790_v7 }
 0xdae   :  { %2385 = vmatprep.subr.mxu1 %v2731_v0 }
 0xdaf   :  { %2386 = vmatpush3.msra.mxu1 %v2794_v9  ;;  %v1067_v24 = vld [vmem:[#allocation2 + $0x20] sm:$0xff] }
 0xdb0   :  { %2410 = vmatprep.subr.mxu1 %v2731_v0 }
 0xe68   :  { %v809_v59 = vpop.f32.mrf.mxu1 }
 0xe69   :  { %v810_v62 = vadd.f32 %v809_v59, %v199_v3 }
 0xe6a   :  { %v2367_v63 = vpop.f32.mrf.mxu1 }
 0xe6b   :  { %2549 = vtanh.f32 %v810_v62  ;;  %v2148_v4 = vmul.f32 -1.442695, %v810_v62 }
 0xe6d   :  { %2551 = vpow2.f32 %v2148_v4 }
 0xe78   :  { %v2550_v1 = vpop.eup %2549 }
 0xe79   :  { %822 = vrot.lane.b32.xlu0 %v2550_v1, %s2733_s5 }
 0xe7a   :  { %v2552_v2 = vpop.eup %2551 }
 0xe7b   :  { %v816_v7 = vadd.f32 1.0, %v2552_v2 }
 0xe7d   :  { %2553 = vrcp.f32 %v816_v7 }
 0xe8a   :  { %v2554_v5 = vpop.eup %2553 }
 0xe8b   :  { %v820_v8 = vmul.f32 %v2554_v5, %v726_v53 }
 0xeeb   :  { %v823_v6 = vpop.permute.xlu0 %822 }
 0xeec   :  { %v825_v9 = vmul.f32 %v2554_v5, %v823_v6 }
 0xeee   :  { %827 = vrot.lane.b32.xlu1 %v825_v9, %s2734_s6 }
 0xf60   :  { %v828_v10 = vpop.permute.xlu1 %827 }
 0xf61   :  { %v830_v58 = vadd.f32 %v828_v10, %v820_v8 }
 0xf63   :  { %2555 = vtanh.f32 %v830_v58 }
 0xf70   :  { %v2556_v12 = vpop.eup %2555 }
 0xf71   :  { %833 = vrot.lane.b32.xlu0 %v2556_v12, %s2733_s5 }
 0xfe3   :  { %v834_v14 = vpop.permute.xlu0 %833 }
 0xfe4   :  { %v836_v15 = vmul.f32 %v2554_v5, %v834_v14 }
 0xfe6   :  { %838 = vrot.lane.b32.xlu1 %v836_v15, %s2734_s6 }
0x1058   :  { %v839_v16 = vpop.permute.xlu1 %838 }
0x1059   :  { %842 = vst.msk [vmem:[#allocation2 + $0x28] sm:$0xff] %vm82_vm1, %v839_v16  ;;  %2377 = vmatmul.mubr.msk.f32.vlgmr.msra.gmra.mxu0 %vm82_vm1, %v839_v16 }
0x105a   :  { %2391 = vmatpush3.msra.mxu0 %v1055_v11  ;;  %2398 = vmatprep.mubr.msk.f32.mxu0 %vm82_vm1, %v1063_v18 }
0x105b   :  { %2392 = vmatprep.subr.mxu0 %v1054_v17 }
0x105c   :  { %2393 = vmatpush3.msra.mxu0 %v1054_v17 }
0x105d   :  { %2394 = vmatprep.subr.mxu0 %v1053_v19 }
0x105e   :  { %2395 = vmatpush3.msra.mxu0 %v1053_v19 }
0x105f   :  { %2396 = vmatprep.subr.mxu0 %v1052_v20 }
0x1060   :  { %2397 = vmatpush3.msra.mxu0 %v1052_v20  ;;  %v1068_v25 = vld [vmem:[#allocation2 + $0x28] sm:$0xff] }
0x1061   :  { %2399 = vmatmul.mubr.msk.f32.vlgmr.msra.gmra.mxu0 %vm82_vm1, %v1064_v21  ;;  %2432 = vmatprep.subr.mxu0 %v2731_v0 }
0x1062   :  { %2401 = vmatprep.mubr.msk.f32.mxu0 %vm82_vm1, %v1065_v22  ;;  %2433 = vmatpush3.msra.mxu0 %v2950_v40 }
0x1063   :  { %2434 = vmatprep.subr.mxu0 %v2731_v0 }
0x1064   :  { %2435 = vmatpush3.msra.mxu0 %v2953_v41 }
0x1065   :  { %2402 = vmatmul.mubr.msk.f32.gmra.mxu0 %vm82_vm1, %v1066_v23  ;;  %2436 = vmatprep.subr.mxu0 %v2731_v0 }
0x1066   :  { %2404 = vmatprep.mubr.msk.f32.mxu0 %vm82_vm1, %v1067_v24  ;;  %2437 = vmatpush3.msra.mxu0 %v2957_v42 }
0x1067   :  { %2438 = vmatprep.subr.mxu0 %v2731_v0 }
0x1068   :  { %2439 = vmatpush3.msra.mxu0 %v2961_v43 }
0x1069   :  { %2405 = vmatmul.mubr.msk.f32.gmra.mxu0 %vm82_vm1, %v1068_v25  ;;  %2454 = vmatprep.subr.mxu0 %v2731_v0 }
0x1119   :  { %v913_v27 = vpop.f32.mrf.mxu0 }
0x111a   :  { %v914_v28 = vadd.f32 %v913_v27, %v204_v26 }
0x111b   :  { %v2378_v29 = vpop.f32.mrf.mxu0 }
0x111c   :  { %2557 = vtanh.f32 %v914_v28  ;;  %v2150_v31 = vmul.f32 -1.442695, %v914_v28 }
0x111e   :  { %2559 = vpow2.f32 %v2150_v31 }
0x1121   :  { %v2993_v49 = vpop.f32.mrf.mxu0 }
0x1122   :  { %v1173_v24 = vadd.f32 %v2993_v49, %v2998_v54 }
0x1123   :  { %v1167_v53 = vpop.f32.mrf.mxu0 }
0x1124   :  { %v1168_v55 = vadd.f32 %v2998_v54, %v1167_v53 }
0x1129   :  { %v2558_v30 = vpop.eup %2557 }
0x112a   :  { %926 = vrot.lane.b32.xlu0 %v2558_v30, %s2733_s5 }
0x112b   :  { %v2560_v32 = vpop.eup %2559 }
0x112c   :  { %v920_v33 = vadd.f32 1.0, %v2560_v32 }
0x112e   :  { %2561 = vrcp.f32 %v920_v33 }
0x113b   :  { %v2562_v34 = vpop.eup %2561 }
0x113c   :  { %v924_v37 = vmul.f32 %v2562_v34, %v830_v58 }
0x119c   :  { %v927_v35 = vpop.permute.xlu0 %926 }
0x119d   :  { %v929_v36 = vmul.f32 %v2562_v34, %v927_v35 }
0x119f   :  { %931 = vrot.lane.b32.xlu1 %v929_v36, %s2734_s6 }
0x1211   :  { %v932_v38 = vpop.permute.xlu1 %931 }
0x1212   :  { %v2946_v61 = vadd.f32 %v932_v38, %v924_v37 }
0x1214   :  { %2563 = vtanh.f32 %v2946_v61 }
0x1221   :  { %v2564_v39 = vpop.eup %2563 }
0x1222   :  { %937 = vrot.lane.b32.xlu0 %v2564_v39, %s2733_s5 }
0x1294   :  { %v938_v44 = vpop.permute.xlu0 %937 }
0x1295   :  { %v940_v45 = vmul.f32 %v2562_v34, %v938_v44 }
0x1297   :  { %942 = vrot.lane.b32.xlu1 %v940_v45, %s2734_s6 }
0x1309   :  { %v943_v46 = vpop.permute.xlu1 %942 }
0x130a   :  { %946 = vst.msk [vmem:[#allocation2 + $0x30] sm:$0xff] %vm82_vm1, %v943_v46  ;;  %2388 = vmatmul.mubr.msk.f32.vlgmr.msra.gmra.mxu1 %vm82_vm1, %v943_v46 }
0x130b   :  { %2411 = vmatpush3.msra.mxu1 %v2950_v40  ;;  %2418 = vmatprep.mubr.msk.f32.mxu1 %vm2732_vm0, %v2731_v0 }
0x130c   :  { %2412 = vmatprep.subr.mxu1 %v2731_v0 }
0x130d   :  { %2413 = vmatpush3.msra.mxu1 %v2953_v41 }
0x130e   :  { %2414 = vmatprep.subr.mxu1 %v2731_v0 }
0x130f   :  { %2415 = vmatpush3.msra.mxu1 %v2957_v42 }
0x1310   :  { %2416 = vmatprep.subr.mxu1 %v2731_v0 }
0x1311   :  { %2417 = vmatpush3.msra.mxu1 %v2961_v43  ;;  %v1069_v47 = vld [vmem:[#allocation2 + $0x30] sm:$0xff] }
0x1312   :  { %2419 = vmatmul.mubr.f32.vlgmr.msra.gmra.mxu1 %v2731_v0  ;;  %2407 = vmatprep.mubr.msk.f32.mxu0 %vm82_vm1, %v1069_v47  ;;  %v2403_v47 = vpop.f32.mrf.mxu0 }
0x1313   :  { %2421 = vmatprep.subr.mxu1 %v2731_v0  ;;  %2429 = vmatprep.mubr.msk.f32.mxu1 %vm2732_vm0, %v2731_v0 }
0x1314   :  { %2422 = vmatpush3.msra.mxu1 %v2950_v40 }
0x1315   :  { %2423 = vmatprep.subr.mxu1 %v2731_v0 }
0x1316   :  { %2424 = vmatpush3.msra.mxu1 %v2953_v41 }
0x1317   :  { %2425 = vmatprep.subr.mxu1 %v2731_v0 }
0x1318   :  { %2426 = vmatpush3.msra.mxu1 %v2957_v42 }
0x1319   :  { %2427 = vmatprep.subr.mxu1 %v2731_v0 }
0x131a   :  { %2428 = vmatpush3.msra.mxu1 %v2961_v43 }
0x131b   :  { %2443 = vmatprep.subr.mxu1 %v2731_v0 }
0x13ca   :  { %v1017_v50 = vpop.f32.mrf.mxu1 }
0x13cb   :  { %v1018_v51 = vadd.f32 %v1017_v50, %v209_v48  ;;  %v1177_v48 = vpop.f32.mrf.mxu0 }
0x13cc   :  { %v2389_v52 = vpop.f32.mrf.mxu1  ;;  %v1178_v53 = vadd.f32 %v2998_v54, %v1177_v48 }
0x13cd   :  { %v2152_v8 = vmul.f32 -1.442695, %v1018_v51  ;;  %v3048_v49 = vpop.f32.mrf.mxu0 }
0x13cf   :  { %v3050_v50 = vpop.f32.mrf.mxu0 }
0x13d2   :  { %v1281_v56 = vpop.f32.mrf.mxu1 }
0x13d3   :  { %v1282_v57 = vadd.f32 %v1281_v56, %v1168_v55 }
0x13d4   :  { %v2420_v3 = vpop.f32.mrf.mxu1 }
0x13d5   :  { %2565 = vtanh.f32 %v1282_v57  ;;  %v2163_v13 = vmul.f32 -1.442695, %v1282_v57 }
0x13d7   :  { %2567 = vpow2.f32 %v2163_v13 }
0x13e2   :  { %v2566_v59 = vpop.eup %2565 }
0x13e3   :  { %1294 = vrot.lane.b32.xlu0 %v2566_v59, %s2733_s5 }
0x13e4   :  { %v2568_v60 = vpop.eup %2567 }
0x13e5   :  { %v1288_v62 = vadd.f32 1.0, %v2568_v60 }
0x13e7   :  { %2569 = vrcp.f32 %v1288_v62 }
0x13f4   :  { %v2570_v63 = vpop.eup %2569 }
0x13f5   :  { %v1292_v2 = vmul.f32 0.0, %v2570_v63 }
0x1455   :  { %v1295_v1 = vpop.permute.xlu0 %1294 }
0x1456   :  { %v1297_v4 = vmul.f32 %v2570_v63, %v1295_v1 }
0x1458   :  { %1299 = vrot.lane.b32.xlu1 %v1297_v4, %s2734_s6 }
0x14ca   :  { %v1300_v7 = vpop.permute.xlu1 %1299 }
0x14cb   :  { %v1302_v5 = vadd.f32 %v1300_v7, %v1292_v2 }
0x14cd   :  { %2571 = vtanh.f32 %v1302_v5 }
0x14ce   :  { %2573 = vtanh.f32 %v1018_v51 }
0x14cf   :  { %2575 = vpow2.f32 %v2152_v8 }
0x14da   :  { %v2572_v6 = vpop.eup %2571 }
0x14db   :  { %1305 = vrot.lane.b32.xlu0 %v2572_v6, %s2733_s5  ;;  %v2574_v9 = vpop.eup %2573 }
0x14dc   :  { %v2576_v10 = vpop.eup %2575 }
0x14dd   :  { %v1024_v58 = vadd.f32 1.0, %v2576_v10  ;;  %v1183_v10 = vadd.f32 %v2403_v47, %v2998_v54 }
0x14df   :  { %1030 = vrot.lane.b32.xlu0 %v2574_v9, %s2733_s5  ;;  %2577 = vrcp.f32 %v1024_v58 }
0x14ec   :  { %v2578_v14 = vpop.eup %2577 }
0x14ed   :  { %v1028_v18 = vmul.f32 %v2578_v14, %v2946_v61 }
0x154d   :  { %v1306_v11 = vpop.permute.xlu0 %1305 }
0x154e   :  { %v3005_v12 = vmul.f32 %v2570_v63, %v1306_v11 }
0x1550   :  { %1322 = vrot.lane.b32.xlu1 %v3005_v12, %s2734_s6 }
0x1551   :  { %v1031_v15 = vpop.permute.xlu0 %1030 }
0x1552   :  { %v1033_v16 = vmul.f32 %v2578_v14, %v1031_v15 }
0x1554   :  { %1035 = vrot.lane.b32.xlu0 %v1033_v16, %s2734_s6 }
0x15c2   :  { %v1323_v17 = vpop.permute.xlu1 %1322 }
0x15c3   :  { %2430 = vmatmul.mubr.msk.f32.vlgmr.msra.gmra.mxu1 %vm82_vm1, %v1323_v17 }
0x15c4   :  { %2444 = vmatpush3.msra.mxu1 %v2950_v40  ;;  %2451 = vmatprep.mubr.msk.f32.mxu1 %vm2732_vm0, %v2731_v0 }
0x15c5   :  { %2445 = vmatprep.subr.mxu1 %v2731_v0 }
0x15c6   :  { %v1036_v19 = vpop.permute.xlu0 %1035  ;;  %2446 = vmatpush3.msra.mxu1 %v2953_v41 }
0x15c7   :  { %v1038_v20 = vadd.f32 %v1036_v19, %v1028_v18  ;;  %2447 = vmatprep.subr.mxu1 %v2731_v0 }
0x15c8   :  { %2448 = vmatpush3.msra.mxu1 %v2957_v42 }
0x15c9   :  { %2579 = vtanh.f32 %v1038_v20  ;;  %2449 = vmatprep.subr.mxu1 %v2731_v0 }
0x15ca   :  { %2450 = vmatpush3.msra.mxu1 %v2961_v43 }
0x15cb   :  { %2465 = vmatprep.subr.mxu1 %v2731_v0 }
0x15d6   :  { %v2580_v21 = vpop.eup %2579 }
0x15d7   :  { %1041 = vrot.lane.b32.xlu0 %v2580_v21, %s2733_s5 }
0x1649   :  { %v1042_v22 = vpop.permute.xlu0 %1041 }
0x164a   :  { %v1044_v23 = vmul.f32 %v2578_v14, %v1042_v22 }
0x164c   :  { %1046 = vrot.lane.b32.xlu0 %v1044_v23, %s2734_s6 }
0x1683   :  { %v1392_v25 = vpop.f32.mrf.mxu1 }
0x1684   :  { %v1393_v26 = vadd.f32 %v1392_v25, %v1173_v24 }
0x1685   :  { %v2431_v27 = vpop.f32.mrf.mxu1 }
0x1686   :  { %2581 = vtanh.f32 %v1393_v26  ;;  %v2165_v31 = vmul.f32 -1.442695, %v1393_v26 }
0x1688   :  { %2583 = vpow2.f32 %v2165_v31 }
0x1693   :  { %v2582_v28 = vpop.eup %2581 }
0x1694   :  { %1405 = vrot.lane.b32.xlu1 %v2582_v28, %s2733_s5 }
0x1695   :  { %v2584_v32 = vpop.eup %2583 }
0x1696   :  { %v1399_v33 = vadd.f32 1.0, %v2584_v32 }
0x1698   :  { %2585 = vrcp.f32 %v1399_v33 }
0x16a5   :  { %v2586_v34 = vpop.eup %2585 }
0x16a6   :  { %v1403_v37 = vmul.f32 %v2586_v34, %v1302_v5 }
0x16be   :  { %v1047_v29 = vpop.permute.xlu0 %1046 }
0x16bf   :  { %1050 = vst.msk [vmem:[#allocation2 + $0x38] sm:$0xff] %vm82_vm1, %v1047_v29  ;;  %v1188_v29 = vadd.f32 %v2998_v54, %v3050_v50 }
0x16c6   :  { %v1070_v30 = vld [vmem:[#allocation2 + $0x38] sm:$0xff] }
0x16c7   :  { %2408 = vmatmul.mubr.msk.f32.gmra.mxu0 %vm82_vm1, %v1070_v30 }
0x16c8   :  { %2440 = vmatprep.mubr.msk.f32.mxu0 %vm2732_vm0, %v2731_v0 }
0x1706   :  { %v1406_v35 = vpop.permute.xlu1 %1405 }
0x1707   :  { %v1408_v36 = vmul.f32 %v2586_v34, %v1406_v35 }
0x1709   :  { %1410 = vrot.lane.b32.xlu1 %v1408_v36, %s2734_s6 }
0x177b   :  { %v1411_v38 = vpop.permute.xlu1 %1410 }
0x177c   :  { %v1413_v61 = vadd.f32 %v1411_v38, %v1403_v37 }
0x177e   :  { %2587 = vtanh.f32 %v1413_v61 }
0x1787   :  { %v3052_v51 = vpop.f32.mrf.mxu0 }
0x1789   :  { %v3054_v52 = vpop.f32.mrf.mxu0 }
0x178b   :  { %v2588_v39 = vpop.eup %2587 }
0x178c   :  { %1416 = vrot.lane.b32.xlu1 %v2588_v39, %s2733_s5 }
0x17fe   :  { %v1417_v44 = vpop.permute.xlu1 %1416 }
0x17ff   :  { %v3033_v45 = vmul.f32 %v2586_v34, %v1417_v44 }
0x1801   :  { %1435 = vrot.lane.b32.xlu1 %v3033_v45, %s2734_s6 }
0x1873   :  { %v1436_v46 = vpop.permute.xlu1 %1435 }
0x1874   :  { %2441 = vmatmul.mubr.msk.f32.vlgmr.msra.gmra.mxu0 %vm82_vm1, %v1436_v46 }
0x1875   :  { %2455 = vmatpush3.msra.mxu0 %v2950_v40  ;;  %2462 = vmatprep.mubr.msk.f32.mxu0 %vm2732_vm0, %v2731_v0 }
0x1876   :  { %2456 = vmatprep.subr.mxu0 %v2731_v0 }
0x1877   :  { %2457 = vmatpush3.msra.mxu0 %v2953_v41 }
0x1878   :  { %2458 = vmatprep.subr.mxu0 %v2731_v0 }
0x1879   :  { %2459 = vmatpush3.msra.mxu0 %v2957_v42 }
0x187a   :  { %2460 = vmatprep.subr.mxu0 %v2731_v0 }
0x187b   :  { %2461 = vmatpush3.msra.mxu0 %v2961_v43 }
0x187c   :  { %2476 = vmatprep.subr.mxu0 %v2731_v0 }
0x1934   :  { %v1505_v55 = vpop.f32.mrf.mxu0 }
0x1935   :  { %v1506_v56 = vadd.f32 %v1505_v55, %v1178_v53  ;;  %v1193_v55 = vadd.f32 %v3048_v49, %v2998_v54 }
0x1936   :  { %v2442_v57 = vpop.f32.mrf.mxu0 }
0x1937   :  { %2589 = vtanh.f32 %v1506_v56  ;;  %v2167_v59 = vmul.f32 -1.442695, %v1506_v56 }
0x1939   :  { %2591 = vpow2.f32 %v2167_v59 }
0x1944   :  { %v2590_v3 = vpop.eup %2589 }
0x1945   :  { %1518 = vrot.lane.b32.xlu0 %v2590_v3, %s2733_s5 }
0x1946   :  { %v2592_v13 = vpop.eup %2591 }
0x1947   :  { %v1512_v60 = vadd.f32 1.0, %v2592_v13 }
0x1949   :  { %2593 = vrcp.f32 %v1512_v60 }
0x1956   :  { %v2594_v62 = vpop.eup %2593 }
0x1957   :  { %v1516_v4 = vmul.f32 %v2594_v62, %v1413_v61 }
0x19b7   :  { %v1519_v63 = vpop.permute.xlu0 %1518 }
0x19b8   :  { %v1521_v1 = vmul.f32 %v2594_v62, %v1519_v63 }
0x19ba   :  { %1523 = vrot.lane.b32.xlu1 %v1521_v1, %s2734_s6 }
0x1a2c   :  { %v1524_v2 = vpop.permute.xlu1 %1523 }
0x1a2d   :  { %v1526_v7 = vadd.f32 %v1524_v2, %v1516_v4 }
0x1a2f   :  { %2595 = vtanh.f32 %v1526_v7 }
0x1a3c   :  { %v2596_v5 = vpop.eup %2595 }
0x1a3d   :  { %1529 = vrot.lane.b32.xlu0 %v2596_v5, %s2733_s5 }
0x1aaf   :  { %v1530_v6 = vpop.permute.xlu0 %1529 }
0x1ab0   :  { %v3060_v9 = vmul.f32 %v2594_v62, %v1530_v6 }
0x1ab2   :  { %1548 = vrot.lane.b32.xlu1 %v3060_v9, %s2734_s6 }
0x1b24   :  { %v1549_v8 = vpop.permute.xlu1 %1548 }
0x1b25   :  { %2452 = vmatmul.mubr.msk.f32.vlgmr.msra.gmra.mxu1 %vm82_vm1, %v1549_v8 }
0x1b26   :  { %2466 = vmatpush3.msra.mxu1 %v2950_v40  ;;  %2473 = vmatprep.mubr.msk.f32.mxu1 %vm2732_vm0, %v2731_v0 }
0x1b27   :  { %2467 = vmatprep.subr.mxu1 %v2731_v0 }
0x1b28   :  { %2468 = vmatpush3.msra.mxu1 %v2953_v41 }
0x1b29   :  { %2469 = vmatprep.subr.mxu1 %v2731_v0 }
0x1b2a   :  { %2470 = vmatpush3.msra.mxu1 %v2957_v42 }
0x1b2b   :  { %2471 = vmatprep.subr.mxu1 %v2731_v0 }
0x1b2c   :  { %2472 = vmatpush3.msra.mxu1 %v2961_v43 }
0x1b2d   :  { %2487 = vmatprep.subr.mxu1 %v2731_v0 }
0x1be5   :  { %v1618_v58 = vpop.f32.mrf.mxu1 }
0x1be6   :  { %v1619_v11 = vadd.f32 %v1618_v58, %v1183_v10 }
0x1be7   :  { %v2453_v14 = vpop.f32.mrf.mxu1 }
0x1be8   :  { %2597 = vtanh.f32 %v1619_v11  ;;  %v2169_v16 = vmul.f32 -1.442695, %v1619_v11 }
0x1bea   :  { %2599 = vpow2.f32 %v2169_v16 }
0x1bf5   :  { %v2598_v15 = vpop.eup %2597 }
0x1bf6   :  { %1631 = vrot.lane.b32.xlu0 %v2598_v15, %s2733_s5 }
0x1bf7   :  { %v2600_v17 = vpop.eup %2599 }
0x1bf8   :  { %v1625_v18 = vadd.f32 1.0, %v2600_v17 }
0x1bfa   :  { %2601 = vrcp.f32 %v1625_v18 }
0x1c07   :  { %v2602_v19 = vpop.eup %2601 }
0x1c08   :  { %v1629_v22 = vmul.f32 %v2602_v19, %v1526_v7  ;;  %v1198_v7 = vadd.f32 %v2998_v54, %v3054_v52 }
0x1c68   :  { %v1632_v20 = vpop.permute.xlu0 %1631 }
0x1c69   :  { %v1634_v21 = vmul.f32 %v2602_v19, %v1632_v20 }
0x1c6b   :  { %1636 = vrot.lane.b32.xlu1 %v1634_v21, %s2734_s6 }
0x1cdd   :  { %v1637_v23 = vpop.permute.xlu1 %1636 }
0x1cde   :  { %v1639_v24 = vadd.f32 %v1637_v23, %v1629_v22 }
0x1ce0   :  { %2603 = vtanh.f32 %v1639_v24 }
0x1ced   :  { %v2604_v25 = vpop.eup %2603 }
0x1cee   :  { %1642 = vrot.lane.b32.xlu0 %v2604_v25, %s2733_s5 }
0x1d60   :  { %v1643_v26 = vpop.permute.xlu0 %1642 }
0x1d61   :  { %v3079_v27 = vmul.f32 %v2602_v19, %v1643_v26 }
0x1d63   :  { %1661 = vrot.lane.b32.xlu1 %v3079_v27, %s2734_s6 }
0x1dd5   :  { %v1662_v28 = vpop.permute.xlu1 %1661 }
0x1dd6   :  { %2463 = vmatmul.mubr.msk.f32.vlgmr.msra.gmra.mxu0 %vm82_vm1, %v1662_v28 }
0x1dd7   :  { %2477 = vmatpush3.msra.mxu0 %v2950_v40  ;;  %2484 = vmatprep.mubr.msk.f32.mxu0 %vm2732_vm0, %v2731_v0 }
0x1dd8   :  { %2478 = vmatprep.subr.mxu0 %v2731_v0 }
0x1dd9   :  { %2479 = vmatpush3.msra.mxu0 %v2953_v41 }
0x1dda   :  { %2480 = vmatprep.subr.mxu0 %v2731_v0 }
0x1ddb   :  { %2481 = vmatpush3.msra.mxu0 %v2957_v42 }
0x1ddc   :  { %2482 = vmatprep.subr.mxu0 %v2731_v0 }
0x1ddd   :  { %2483 = vmatpush3.msra.mxu0 %v2961_v43 }
0x1e96   :  { %v1731_v30 = vpop.f32.mrf.mxu0 }
0x1e97   :  { %v1732_v31 = vadd.f32 %v1731_v30, %v1188_v29  ;;  %v1421_v30 = vld [vmem:[#allocation4 + $0x8] sm:$0xff] }
0x1e98   :  { %v2464_v32 = vpop.f32.mrf.mxu0 }
0x1e99   :  { %2605 = vtanh.f32 %v1732_v31  ;;  %v2171_v34 = vmul.f32 -1.442695, %v1732_v31  ;;  %v2637_v31 = vld [vmem:[#allocation4 + $0x18] sm:$0xff]  ;;  %v2638_v32 = vld [vmem:[#allocation4 + $0x28] sm:$0xff] }
0x1e9b   :  { %2607 = vpow2.f32 %v2171_v34 }
0x1ea6   :  { %v2606_v33 = vpop.eup %2605 }
0x1ea7   :  { %1744 = vrot.lane.b32.xlu0 %v2606_v33, %s2733_s5 }
0x1ea8   :  { %v2608_v35 = vpop.eup %2607 }
0x1ea9   :  { %v1738_v36 = vadd.f32 1.0, %v2608_v35 }
0x1eab   :  { %2609 = vrcp.f32 %v1738_v36 }
0x1eb8   :  { %v2610_v37 = vpop.eup %2609 }
0x1eb9   :  { %v1742_v39 = vmul.f32 %v2610_v37, %v1639_v24  ;;  %v1203_v24 = vadd.f32 %v3052_v51, %v2998_v54 }
0x1f19   :  { %v1745_v38 = vpop.permute.xlu0 %1744 }
0x1f1a   :  { %v1747_v61 = vmul.f32 %v2610_v37, %v1745_v38  ;;  %v1534_v38 = vld [vmem:[#allocation4 + $0x10] sm:$0xff] }
0x1f1c   :  { %1749 = vrot.lane.b32.xlu1 %v1747_v61, %s2734_s6  ;;  %v1760_v61 = vld [vmem:[#allocation4 + $0x20] sm:$0xff] }
0x1f8e   :  { %v1750_v44 = vpop.permute.xlu1 %1749 }
0x1f8f   :  { %v1752_v46 = vadd.f32 %v1750_v44, %v1742_v39  ;;  %v2639_v39 = vld [vmem:[#allocation4 + $0x30] sm:$0xff] }
0x1f91   :  { %2611 = vtanh.f32 %v1752_v46 }
0x1f9e   :  { %v2612_v47 = vpop.eup %2611 }
0x1f9f   :  { %1755 = vrot.lane.b32.xlu0 %v2612_v47, %s2733_s5 }
0x2011   :  { %v1756_v48 = vpop.permute.xlu0 %1755 }
0x2012   :  { %v3098_v50 = vmul.f32 %v2610_v37, %v1756_v48  ;;  %v1309_v37 = vld [vmem:[#allocation4] sm:$0xff] }
0x2014   :  { %1774 = vrot.lane.b32.xlu1 %v3098_v50, %s2734_s6 }
0x2086   :  { %v1775_v53 = vpop.permute.xlu1 %1774 }
0x2087   :  { %2474 = vmatmul.mubr.msk.f32.vlgmr.msra.gmra.mxu1 %vm82_vm1, %v1775_v53 }
0x2088   :  { %2488 = vmatpush3.msra.mxu1 %v2950_v40  ;;  %2495 = vmatprep.mubr.msk.f32.mxu1 %vm2732_vm0, %v2731_v0 }
0x2089   :  { %2489 = vmatprep.subr.mxu1 %v2731_v0 }
0x208a   :  { %2490 = vmatpush3.msra.mxu1 %v2953_v41 }
0x208b   :  { %2491 = vmatprep.subr.mxu1 %v2731_v0 }
0x208c   :  { %2492 = vmatpush3.msra.mxu1 %v2957_v42 }
0x208d   :  { %2493 = vmatprep.subr.mxu1 %v2731_v0 }
0x208e   :  { %2494 = vmatpush3.msra.mxu1 %v2961_v43 }
0x2147   :  { %v1844_v56 = vpop.f32.mrf.mxu1 }
0x2148   :  { %v1845_v40 = vadd.f32 %v1844_v56, %v1193_v55 }
0x2149   :  { %v2475_v57 = vpop.f32.mrf.mxu1 }
0x214a   :  { %2613 = vtanh.f32 %v1845_v40  ;;  %v2173_v59 = vmul.f32 -1.442695, %v1845_v40 }
0x214c   :  { %2615 = vpow2.f32 %v2173_v59 }
0x2157   :  { %v2614_v3 = vpop.eup %2613 }
0x2158   :  { %1857 = vrot.lane.b32.xlu0 %v2614_v3, %s2733_s5 }
0x2159   :  { %v2616_v41 = vpop.eup %2615 }
0x215a   :  { %v1851_v13 = vadd.f32 1.0, %v2616_v41 }
0x215c   :  { %2617 = vrcp.f32 %v1851_v13 }
0x2169   :  { %v2618_v42 = vpop.eup %2617 }
0x216a   :  { %v1855_v43 = vmul.f32 %v2618_v42, %v1752_v46 }
0x21ca   :  { %v1858_v60 = vpop.permute.xlu0 %1857 }
0x21cb   :  { %v1860_v0 = vmul.f32 %v2618_v42, %v1858_v60 }
0x21cd   :  { %1862 = vrot.lane.b32.xlu1 %v1860_v0, %s2734_s6 }
0x223f   :  { %v1863_v62 = vpop.permute.xlu1 %1862 }
0x2240   :  { %v1865_v49 = vadd.f32 %v1863_v62, %v1855_v43 }
0x2242   :  { %2619 = vtanh.f32 %v1865_v49 }
0x224f   :  { %v2620_v63 = vpop.eup %2619 }
0x2250   :  { %1868 = vrot.lane.b32.xlu0 %v2620_v63, %s2733_s5 }
0x22c2   :  { %v1869_v1 = vpop.permute.xlu0 %1868 }
0x22c3   :  { %v3117_v4 = vmul.f32 %v2618_v42, %v1869_v1  ;;  %v2099_v42 = vld [vmem:[#allocation4 + $0x38] sm:$0xff] }
0x22c5   :  { %1887 = vrot.lane.b32.xlu1 %v3117_v4, %s2734_s6 }
0x2337   :  { %v1888_v2 = vpop.permute.xlu1 %1887 }
0x2338   :  { %2485 = vmatmul.mubr.msk.f32.vlgmr.msra.gmra.mxu0 %vm82_vm1, %v1888_v2 }
0x23f8   :  { %v1957_v5 = vpop.f32.mrf.mxu0 }
0x23f9   :  { %v1958_v6 = vadd.f32 %v1957_v5, %v1198_v7 }
0x23fa   :  { %v2486_v8 = vpop.f32.mrf.mxu0 }
0x23fb   :  { %2621 = vtanh.f32 %v1958_v6  ;;  %v2175_v58 = vmul.f32 -1.442695, %v1958_v6 }
0x23fd   :  { %2623 = vpow2.f32 %v2175_v58 }
0x2408   :  { %v2622_v10 = vpop.eup %2621 }
0x2409   :  { %1970 = vrot.lane.b32.xlu0 %v2622_v10, %s2733_s5 }
0x240a   :  { %v2624_v11 = vpop.eup %2623 }
0x240b   :  { %v1964_v14 = vadd.f32 1.0, %v2624_v11 }
0x240d   :  { %2625 = vrcp.f32 %v1964_v14 }
0x241a   :  { %v2626_v15 = vpop.eup %2625 }
0x241b   :  { %v1968_v18 = vmul.f32 %v2626_v15, %v1865_v49 }
0x247b   :  { %v1971_v16 = vpop.permute.xlu0 %1970 }
0x247c   :  { %v1973_v17 = vmul.f32 %v2626_v15, %v1971_v16 }
0x247e   :  { %1975 = vrot.lane.b32.xlu1 %v1973_v17, %s2734_s6 }
0x24f0   :  { %v1976_v19 = vpop.permute.xlu1 %1975 }
0x24f1   :  { %v1978_v52 = vadd.f32 %v1976_v19, %v1968_v18 }
0x24f3   :  { %2627 = vtanh.f32 %v1978_v52 }
0x2500   :  { %v2628_v20 = vpop.eup %2627 }
0x2501   :  { %1981 = vrot.lane.b32.xlu0 %v2628_v20, %s2733_s5 }
0x2573   :  { %v1982_v21 = vpop.permute.xlu0 %1981 }
0x2574   :  { %v1984_v22 = vmul.f32 %v2626_v15, %v1982_v21 }
0x2576   :  { %2000 = vrot.lane.b32.xlu1 %v1984_v22, %s2734_s6 }
0x25e8   :  { %v2001_v23 = vpop.permute.xlu1 %2000 }
0x25e9   :  { %2496 = vmatmul.mubr.msk.f32.vlgmr.msra.gmra.mxu1 %vm82_vm1, %v2001_v23 }
0x26a9   :  { %v2070_v25 = vpop.f32.mrf.mxu1 }
0x26aa   :  { %v2071_v26 = vadd.f32 %v2070_v25, %v1203_v24 }
0x26ab   :  { %v2497_v28 = vpop.f32.mrf.mxu1 }
0x26ac   :  { %2629 = vtanh.f32 %v2071_v26  ;;  %v2177_v33 = vmul.f32 -1.442695, %v2071_v26 }
0x26ae   :  { %2631 = vpow2.f32 %v2177_v33 }
0x26b9   :  { %v2630_v29 = vpop.eup %2629 }
0x26ba   :  { %2083 = vrot.lane.b32.xlu0 %v2630_v29, %s2733_s5 }
0x26bb   :  { %v2632_v54 = vpop.eup %2631 }
0x26bc   :  { %v2077_v51 = vadd.f32 1.0, %v2632_v54 }
0x26be   :  { %1423 = vrot.lane.b32.xlu0 %v1421_v30, %s2735_s3  ;;  %2633 = vrcp.f32 %v2077_v51 }
0x26c2   :  { %1649 = vrot.lane.b32.xlu0 %v2637_v31, %s2735_s3 }
0x26c6   :  { %1875 = vrot.lane.b32.xlu0 %v2638_v32, %s2735_s3 }
0x26cb   :  { %v2634_v34 = vpop.eup %2633 }
0x26cc   :  { %v2081_v44 = vmul.f32 %v2634_v34, %v1978_v52 }
0x272c   :  { %v2084_v35 = vpop.permute.xlu0 %2083 }
0x272d   :  { %v2086_v36 = vmul.f32 %v2634_v34, %v2084_v35 }
0x272f   :  { %2088 = vrot.lane.b32.xlu1 %v2086_v36, %s2734_s6 }
0x2730   :  { %v1424_v59 = vpop.permute.xlu0 %1423 }
0x2733   :  { %1311 = vrot.lane.b32.xlu1 %v1309_v37, %s2735_s3 }
0x2737   :  { %1536 = vrot.lane.b32.xlu1 %v1534_v38, %s2735_s3 }
0x273b   :  { %1762 = vrot.lane.b32.xlu1 %v1760_v61, %s2735_s3 }
0x273f   :  { %1988 = vrot.lane.b32.xlu1 %v2639_v39, %s2735_s3 }
0x27a1   :  { %v2089_v46 = vpop.permute.xlu1 %2088 }
0x27a2   :  { %v2091_v47 = vadd.f32 %v2089_v46, %v2081_v44 }
0x27a4   :  { %2635 = vtanh.f32 %v2091_v47 }
0x27a5   :  { %v1312_v48 = vpop.permute.xlu1 %1311 }
0x27a6   :  { %v1314_v53 = vadd.f32 %v1312_v48, %v3005_v12  ;;  %v1650_v12 = vpop.permute.xlu0 %1649 }
0x27a8   :  { %1316 = vrot.lane.b32.xlu1 %v1314_v53, %s2734_s6 }
0x27a9   :  { %v1537_v55 = vpop.permute.xlu1 %1536 }
0x27aa   :  { %v1539_v56 = vadd.f32 %v1537_v55, %v3060_v9  ;;  %v1426_v9 = vadd.f32 %v1424_v59, %v3033_v45  ;;  %v1876_v60 = vpop.permute.xlu0 %1875 }
0x27ab   :  { %v1878_v0 = vadd.f32 %v1876_v60, %v3117_v4 }
0x27ac   :  { %1541 = vrot.lane.b32.xlu1 %v1539_v56, %s2734_s6 }
0x27ad   :  { %v1763_v40 = vpop.permute.xlu1 %1762 }
0x27ae   :  { %v1765_v57 = vadd.f32 %v1763_v40, %v3098_v50  ;;  %v1652_v50 = vadd.f32 %v1650_v12, %v3079_v27 }
0x27b0   :  { %1767 = vrot.lane.b32.xlu1 %v1765_v57, %s2734_s6 }
0x27b1   :  { %v2636_v3 = vpop.eup %2635  ;;  %v1989_v41 = vpop.permute.xlu1 %1988 }
0x27b2   :  { %v1991_v13 = vadd.f32 %v1989_v41, %v1984_v22  ;;  %2094 = vrot.lane.b32.xlu0 %v2636_v3, %s2733_s5 }
0x27b4   :  { %1993 = vrot.lane.b32.xlu1 %v1991_v13, %s2734_s6 }
0x27b6   :  { %2101 = vrot.lane.b32.xlu0 %v2099_v42, %s2735_s3 }
0x27ba   :  { %1428 = vrot.lane.b32.xlu0 %v1426_v9, %s2734_s6 }
0x27be   :  { %1654 = vrot.lane.b32.xlu0 %v1652_v50, %s2734_s6 }
0x27c2   :  { %1880 = vrot.lane.b32.xlu0 %v1878_v0, %s2734_s6 }
0x281a   :  { %v1317_v43 = vpop.permute.xlu1 %1316 }
0x281b   :  { %1319 = vst.msk [vmem:[#allocation10] sm:$0xff] %vm82_vm1, %v1317_v43 }
0x281e   :  { %v1542_v62 = vpop.permute.xlu1 %1541 }
0x281f   :  { %1545 = vst.msk [vmem:[#allocation10 + $0x10] sm:$0xff] %vm82_vm1, %v1542_v62 }
0x2822   :  { %v1768_v49 = vpop.permute.xlu1 %1767 }
0x2823   :  { %1771 = vst.msk [vmem:[#allocation10 + $0x20] sm:$0xff] %vm82_vm1, %v1768_v49 }
0x2824   :  { %v2095_v45 = vpop.permute.xlu0 %2094 }
0x2825   :  { %v2097_v1 = vmul.f32 %v2634_v34, %v2095_v45 }
0x2826   :  { %v1994_v63 = vpop.permute.xlu1 %1993 }
0x2827   :  { %1997 = vst.msk [vmem:[#allocation10 + $0x30] sm:$0xff] %vm82_vm1, %v1994_v63 }
0x2828   :  { %v2102_v27 = vpop.permute.xlu0 %2101 }
0x2829   :  { %v2104_v2 = vadd.f32 %v2102_v27, %v2097_v1 }
0x282b   :  { %2106 = vrot.lane.b32.xlu0 %v2104_v2, %s2734_s6 }
0x282c   :  { %v1429_v4 = vpop.permute.xlu0 %1428 }
0x282d   :  { %1432 = vst.msk [vmem:[#allocation10 + $0x8] sm:$0xff] %vm82_vm1, %v1429_v4 }
0x2830   :  { %v1655_v7 = vpop.permute.xlu0 %1654 }
0x2831   :  { %1658 = vst.msk [vmem:[#allocation10 + $0x18] sm:$0xff] %vm82_vm1, %v1655_v7 }
0x2834   :  { %v1881_v5 = vpop.permute.xlu0 %1880 }
0x2835   :  { %1884 = vst.msk [vmem:[#allocation10 + $0x28] sm:$0xff] %vm82_vm1, %v1881_v5 }
0x289d   :  { %v2107_v6 = vpop.permute.xlu0 %2106 }
0x289e   :  { %2110 = vst.msk [vmem:[#allocation10 + $0x38] sm:$0xff] %vm82_vm1, %v2107_v6 }
0x289f   :  { %2711 = shalt.err (!%p2708_p5)
}
0x28a0   :  { %2122 = dma.vmem_to_hbm [thread:$0]  %s2117_s10, 1024, %s3174_s4, [#allocation6], %s2728_s20, %s2728_s20, %s2729_s21  }
0x28a1   :  { %2724 = dma.done.wait [#allocation6], 1024  }
0x28a2   :  { %2725 = vsyncadd [#allocation6], 4294966272 }
0x28a3   :  { %2126 = vsyncpa [#allocation5], 1 }
0x28a4   :  { %2127 = vsyncpa [#allocation8], 1 }
0x28a5   :  { %2128 = vsyncpa [#allocation6], 1 }

</bundles_post_ra>
